<compile_context>
chip_gen: v6e
topology: v6e:2x2x1
jax: 0.10.0
libtpu: 0.0.40
codegen_flags: <defaults>
</compile_context>

<pallas_src>
import math
import functools

import jax
import jax.numpy as jnp
from jax import lax
from jax.experimental import pallas as pl
from jax.experimental.pallas import tpu as pltpu


def _mha_kernel(q_ref, k_ref, v_ref,
                wq_ref, bq_ref, wk_ref, bk_ref,
                wv_ref, bv_ref, wo_ref, bo_ref,
                o_ref,
                kh_scr, vh_scr,
                *, h, d_k, d_v, n_kt, tk):
    f32 = jnp.float32
    bf16 = jnp.bfloat16
    tq = q_ref.shape[1]

    # ---- K/V projections: once per batch (first q-tile) into VMEM scratch,
    #      reused by all query tiles of this batch (q axis is "arbitrary").
    @pl.when(pl.program_id(1) == 0)
    def _():
        k_in = k_ref[0]                                          # (nk, d_model) bf16
        v_in = v_ref[0]
        nk = k_in.shape[0]
        # One flat matmul per projection: full h*d_k / h*d_v MXU column width.
        kh = jnp.dot(k_in, wk_ref[...], preferred_element_type=f32) + bk_ref[...]
        vh = jnp.dot(v_in, wv_ref[...], preferred_element_type=f32) + bv_ref[...]
        # Store head-major bf16 for the batched attention / PV matmuls.
        kh_scr[...] = kh.astype(bf16).reshape(nk, h, d_k).transpose(1, 0, 2)
        vh_scr[...] = vh.astype(bf16).reshape(nk, h, d_v).transpose(1, 0, 2)

    # ---- Q projection (1/sqrt(d_k) already folded into wq/bq in the wrapper).
    q_in = q_ref[0]                                              # (tq, d_model) bf16
    qh = jnp.dot(q_in, wq_ref[...], preferred_element_type=f32) + bq_ref[...]
    qh = qh.astype(bf16).reshape(tq, h, d_k).transpose(1, 0, 2)  # (h, tq, d_k)

    # ---- Flash-style online softmax over kv tiles: bounds live score/prob
    #      tensors to (h, tq, tk) regardless of nk.
    def kv_step(t, carry):
        m_prev, l_prev, acc_prev = carry
        if n_kt == 1:
            k_t = kh_scr[...]                                    # (h, nk, d_k) bf16
            v_t = vh_scr[...]
        else:
            start = pl.multiple_of(t * tk, tk)
            k_t = kh_scr[:, pl.ds(start, tk), :]                 # (h, tk, d_k) bf16
            v_t = vh_scr[:, pl.ds(start, tk), :]                 # (h, tk, d_v) bf16
        s = jnp.einsum('hqd,hkd->hqk', qh, k_t,
                       preferred_element_type=f32)               # (h, tq, tk) f32
        m_new = jnp.maximum(m_prev, jnp.max(s, axis=-1, keepdims=True))
        alpha = jnp.exp(m_prev - m_new)
        p = jnp.exp(s - m_new)
        l_new = alpha * l_prev + jnp.sum(p, axis=-1, keepdims=True)
        acc_new = alpha * acc_prev + jnp.einsum(
            'hqk,hkv->hqv', p.astype(bf16), v_t, preferred_element_type=f32)
        return m_new, l_new, acc_new

    m0 = jnp.full((h, tq, 1), -jnp.inf, f32)
    l0 = jnp.zeros((h, tq, 1), f32)
    acc0 = jnp.zeros((h, tq, d_v), f32)
    _, l_fin, acc = lax.fori_loop(0, n_kt, kv_step, (m0, l0, acc0))

    # Normalize with the EUP approx reciprocal (~1e-3 rel err; fine for inference).
    ctx = acc * pl.reciprocal(l_fin, approx=True)                # (h, tq, d_v) f32

    # ---- Output projection: single flat matmul against (h*d_v, d_model);
    #      accumulation over heads happens inside the MXU contraction.
    ctx_flat = ctx.astype(bf16).transpose(1, 0, 2).reshape(tq, h * d_v)
    out = jnp.dot(ctx_flat, wo_ref[...], preferred_element_type=f32) + bo_ref[...]
    # NOTE: d_model < 128 (tiny test) lowers to masked stores; fine at realistic d_model.
    o_ref[0] = out.astype(o_ref.dtype)


def _vmem_limit_bytes(tq, nk, tk, d_model, h, d_k, d_v):
    """Rough per-step working-set estimate, clamped to [32 MiB, 64 MiB]."""
    bf, f4 = 2, 4
    blocks = tq * d_model * bf + 2 * nk * d_model * bf + tq * d_model * f4
    weights = ((2 * d_model * h * d_k + d_model * h * d_v + h * d_v * d_model) * bf
               + (2 * h * d_k + h * d_v + d_model) * f4)
    scratch = h * nk * (d_k + d_v) * bf
    interm = (tq * h * d_k + 2 * h * tq * tk + h * tq * d_v + tq * d_model) * f4
    est = 2 * (blocks + weights) + scratch + 3 * interm + (4 << 20)
    return int(min(max(est, 32 << 20), 64 << 20))


def scaled_dot_product_attention(queries, keys, values, params, *, h, d_k, d_v,
                                 tq_max=256):
    """queries: (b, nq, d_model); keys/values: (b, nk, d_model). Eval-mode forward."""
    b_s, nq, d_model = queries.shape
    nk = keys.shape[1]
    wq, bq, wk, bk, wv, bv, wo, bo = params

    bf16, f32 = jnp.bfloat16, jnp.float32
    scale = 1.0 / math.sqrt(d_k)

    # --- One-time wrapper-side prep: bf16 flat weights (scale folded into fc_q
    #     weight AND bias), f32 biases, bf16 activations (halves activation DMA).
    wq_s = (wq.astype(f32) * scale).astype(bf16)          # (d_model, h*d_k)
    bq_s = (bq.astype(f32) * scale).reshape(1, h * d_k)
    wk_b = wk.astype(bf16)                                # (d_model, h*d_k)
    bk_2 = bk.astype(f32).reshape(1, h * d_k)
    wv_b = wv.astype(bf16)                                # (d_model, h*d_v)
    bv_2 = bv.astype(f32).reshape(1, h * d_v)
    wo_b = wo.astype(bf16)                                # (h*d_v, d_model)
    bo_2 = bo.astype(f32).reshape(1, d_model)

    q_bf = queries.astype(bf16)
    k_bf = keys.astype(bf16)
    v_bf = values.astype(bf16)

    # --- Query tiling: cdiv grid + zero-padded last q tile (sliced off after the
    #     call; padded rows never influence valid rows). tq_max=256 fills the
    #     256-wide MXU rows on v6e/v7x; pass tq_max=128 on v5e.
    if nq > tq_max:
        tq = tq_max
        nq_p = int(pl.cdiv(nq, tq)) * tq
        if nq_p != nq:
            q_bf = jnp.pad(q_bf, ((0, 0), (0, nq_p - nq), (0, 0)))
    else:
        tq, nq_p = nq, nq
    n_qt = nq_p // tq

    # --- KV tiling for the in-kernel online softmax.
    tk = nk
    for cand in (512, 256, 128):
        if nk > cand and nk % cand == 0:
            tk = cand
            break
    n_kt = nk // tk

    kernel = functools.partial(_mha_kernel, h=h, d_k=d_k, d_v=d_v,
                               n_kt=n_kt, tk=tk)

    def rep(shape):
        nd = len(shape)
        # Full-extent block, constant index map (stays resident across the grid).
        return pl.BlockSpec(shape, lambda b, q, _nd=nd: (0,) * _nd)

    grid_spec = pltpu.PrefetchScalarGridSpec(
        num_scalar_prefetch=0,
        grid=(b_s, n_qt),
        in_specs=[
            pl.BlockSpec((1, tq, d_model), lambda b, q: (b, q, 0)),
            pl.BlockSpec((1, nk, d_model), lambda b, q: (b, 0, 0)),
            pl.BlockSpec((1, nk, d_model), lambda b, q: (b, 0, 0)),
            rep(wq_s.shape), rep(bq_s.shape),
            rep(wk_b.shape), rep(bk_2.shape),
            rep(wv_b.shape), rep(bv_2.shape),
            rep(wo_b.shape), rep(bo_2.shape),
        ],
        out_specs=pl.BlockSpec((1, tq, d_model), lambda b, q: (b, q, 0)),
        scratch_shapes=[
            pltpu.VMEM((h, nk, d_k), bf16),   # per-batch projected K, head-major
            pltpu.VMEM((h, nk, d_v), bf16),   # per-batch projected V, head-major
        ],
    )

    out = pl.pallas_call(
        kernel,
        out_shape=jax.ShapeDtypeStruct((b_s, nq_p, d_model), queries.dtype),
        grid_spec=grid_spec,
        compiler_params=pltpu.CompilerParams(
            # batch: megacore-parallel; q axis: sequential so the K/V scratch
            # written at q==0 is visible to every later q tile of that batch.
            dimension_semantics=("parallel", "arbitrary"),
            vmem_limit_bytes=_vmem_limit_bytes(tq, nk, tk, d_model, h, d_k, d_v),
        ),
    )(q_bf, k_bf, v_bf,
      wq_s, bq_s, wk_b, bk_2, wv_b, bv_2, wo_b, bo_2)

    return out[:, :nq] if nq_p != nq else out


def init_params(key, d_model, d_k, d_v, h):
    """Xavier-uniform weights stored as (in, out) so x @ W matches nn.Linear; zero biases."""
    def xavier(key, fan_in, fan_out):
        bound = math.sqrt(6.0 / (fan_in + fan_out))
        return jax.random.uniform(key, (fan_in, fan_out), jnp.float32,
                                  minval=-bound, maxval=bound)

    k1, k2, k3, k4 = jax.random.split(key, 4)
    wq = xavier(k1, d_model, h * d_k)
    wk = xavier(k2, d_model, h * d_k)
    wv = xavier(k3, d_model, h * d_v)
    wo = xavier(k4, h * d_v, d_model)
    bq = jnp.zeros((h * d_k,), jnp.float32)
    bk = jnp.zeros((h * d_k,), jnp.float32)
    bv = jnp.zeros((h * d_v,), jnp.float32)
    bo = jnp.zeros((d_model,), jnp.float32)
    return (wq, bq, wk, bk, wv, bv, wo, bo)


def reference_attention(queries, keys, values, params, *, h, d_k, d_v,
                        matmul_dtype=jnp.float32):
    """Pure-JAX reference mirroring the PyTorch forward (eval mode).
    matmul_dtype=bfloat16 mirrors the kernel's mixed-precision cast points."""
    wq, bq, wk, bk, wv, bv, wo, bo = params
    b_s, nq, _ = queries.shape
    nk = keys.shape[1]
    md = matmul_dtype

    def mm(a, b):
        return jnp.matmul(a.astype(md), b.astype(md),
                          preferred_element_type=jnp.float32)

    q = (mm(queries, wq) + bq) / math.sqrt(d_k)
    k = mm(keys, wk) + bk
    v = mm(values, wv) + bv
    q = q.reshape(b_s, nq, h, d_k).transpose(0, 2, 1, 3)   # (b, h, nq, d_k)
    k = k.reshape(b_s, nk, h, d_k).transpose(0, 2, 1, 3)   # (b, h, nk, d_k)
    v = v.reshape(b_s, nk, h, d_v).transpose(0, 2, 1, 3)   # (b, h, nk, d_v)
    att = jnp.einsum('bhqd,bhkd->bhqk', q.astype(md), k.astype(md),
                     preferred_element_type=jnp.float32)
    att = jax.nn.softmax(att, axis=-1)
    out = jnp.einsum('bhqk,bhkv->bhqv', att.astype(md), v.astype(md),
                     preferred_element_type=jnp.float32)
    out = out.transpose(0, 2, 1, 3).reshape(b_s, nq, h * d_v)
    return mm(out, wo) + bo


def _run_case(key, *, b_s, nq, nk, d_model, d_k, d_v, h):
    kq, kk, kv_, kp = jax.random.split(key, 4)
    queries = jax.random.normal(kq, (b_s, nq, d_model), jnp.float32)
    keys = jax.random.normal(kk, (b_s, nk, d_model), jnp.float32)
    values = jax.random.normal(kv_, (b_s, nk, d_model), jnp.float32)
    params = init_params(kp, d_model, d_k, d_v, h)

    out = scaled_dot_product_attention(queries, keys, values, params,
                                       h=h, d_k=d_k, d_v=d_v)
    out = jax.block_until_ready(out)
    assert out.shape == (b_s, nq, d_model)

    # Tight check against a reference with matching bf16 cast points.
    ref_bf16 = reference_attention(queries, keys, values, params,
                                   h=h, d_k=d_k, d_v=d_v,
                                   matmul_dtype=jnp.bfloat16)
    assert jnp.allclose(out, ref_bf16, atol=3e-2, rtol=3e-2), \
        "mismatch vs bf16-matched JAX reference"

    # Loose sanity check against the full-f32 PyTorch-equivalent reference.
    ref_f32 = reference_attention(queries, keys, values, params,
                                  h=h, d_k=d_k, d_v=d_v,
                                  matmul_dtype=jnp.float32)
    assert jnp.allclose(out, ref_f32, atol=2e-1, rtol=2e-1), \
        "mismatch vs f32 JAX reference"


if __name__ == "__main__":
    root = jax.random.PRNGKey(0)
    k1, k2 = jax.random.split(root)

    # Case 1: tiny shapes (single q tile, single kv tile).
    _run_case(k1, b_s=2, nq=8, nk=8, d_model=32, d_k=8, d_v=8, h=4)

    # Case 2: exercises the cdiv q grid with a padded last tile (nq=300 -> 2x256),
    # the per-batch K/V hoisting across q tiles, and the multi-tile online
    # softmax kv loop (nk=256, tk=128).
    _run_case(k2, b_s=2, nq=300, nk=256, d_model=128, d_k=32, d_v=32, h=4)

    print("KERNEL_OK")
</pallas_src>

<mosaic_0001>
module attributes {stable_mosaic.version = 11 : i64} {
  func.func @_mha_kernel(%arg0: i32, %arg1: i32, %arg2: memref<1x8x32xbf16, #tpu.memory_space<vmem>>, %arg3: memref<1x8x32xbf16, #tpu.memory_space<vmem>>, %arg4: memref<1x8x32xbf16, #tpu.memory_space<vmem>>, %arg5: memref<32x32xbf16, #tpu.memory_space<vmem>>, %arg6: memref<1x32xf32, #tpu.memory_space<vmem>>, %arg7: memref<32x32xbf16, #tpu.memory_space<vmem>>, %arg8: memref<1x32xf32, #tpu.memory_space<vmem>>, %arg9: memref<32x32xbf16, #tpu.memory_space<vmem>>, %arg10: memref<1x32xf32, #tpu.memory_space<vmem>>, %arg11: memref<32x32xbf16, #tpu.memory_space<vmem>>, %arg12: memref<1x32xf32, #tpu.memory_space<vmem>>, %arg13: memref<1x8x32xf32, #tpu.memory_space<vmem>>, %arg14: memref<4x8x8xbf16, #tpu.memory_space<vmem>>, %arg15: memref<4x8x8xbf16, #tpu.memory_space<vmem>>) attributes {dimension_semantics = [#tpu.dimension_semantics<parallel>, #tpu.dimension_semantics<arbitrary>], iteration_bounds = array<i64: 2, 1>, scalar_prefetch = 0 : i64, scratch_operands = 2 : i64, tpu.core_type = #tpu.core_type<tc>, window_params = [{transform_indices = @transform_0, window_bounds = array<i64: 1, 8, 32>}, {transform_indices = @transform_1, window_bounds = array<i64: 1, 8, 32>}, {transform_indices = @transform_2, window_bounds = array<i64: 1, 8, 32>}, {pipeline_mode = #tpu.pipeline_mode<synchronous>, transform_indices = @transform_3, window_bounds = array<i64: 32, 32>}, {pipeline_mode = #tpu.pipeline_mode<synchronous>, transform_indices = @transform_4, window_bounds = array<i64: 1, 32>}, {pipeline_mode = #tpu.pipeline_mode<synchronous>, transform_indices = @transform_5, window_bounds = array<i64: 32, 32>}, {pipeline_mode = #tpu.pipeline_mode<synchronous>, transform_indices = @transform_6, window_bounds = array<i64: 1, 32>}, {pipeline_mode = #tpu.pipeline_mode<synchronous>, transform_indices = @transform_7, window_bounds = array<i64: 32, 32>}, {pipeline_mode = #tpu.pipeline_mode<synchronous>, transform_indices = @transform_8, window_bounds = array<i64: 1, 32>}, {pipeline_mode = #tpu.pipeline_mode<synchronous>, transform_indices = @transform_9, window_bounds = array<i64: 32, 32>}, {pipeline_mode = #tpu.pipeline_mode<synchronous>, transform_indices = @transform_10, window_bounds = array<i64: 1, 32>}, {transform_indices = @transform_11, window_bounds = array<i64: 1, 8, 32>}]} {
    %c0_i32 = arith.constant 0 : i32
    %0 = arith.cmpi eq, %arg1, %c0_i32 : i32
    %1 = arith.extui %0 : i1 to i32
    %c0_i32_0 = arith.constant 0 : i32
    %2 = arith.cmpi ne, %1, %c0_i32_0 : i32
    scf.if %2 {
      %c0_29 = arith.constant 0 : index
      %c0_30 = arith.constant 0 : index
      %c0_31 = arith.constant 0 : index
      %50 = vector.load %arg3[%c0_29, %c0_30, %c0_31] : memref<1x8x32xbf16, #tpu.memory_space<vmem>>, vector<1x8x32xbf16>
      %51 = vector.shape_cast %50 : vector<1x8x32xbf16> to vector<8x32xbf16>
      %c0_32 = arith.constant 0 : index
      %c0_33 = arith.constant 0 : index
      %c0_34 = arith.constant 0 : index
      %52 = vector.load %arg4[%c0_32, %c0_33, %c0_34] : memref<1x8x32xbf16, #tpu.memory_space<vmem>>, vector<1x8x32xbf16>
      %53 = vector.shape_cast %52 : vector<1x8x32xbf16> to vector<8x32xbf16>
      %c0_35 = arith.constant 0 : index
      %c0_36 = arith.constant 0 : index
      %54 = vector.load %arg7[%c0_35, %c0_36] : memref<32x32xbf16, #tpu.memory_space<vmem>>, vector<32x32xbf16>
      %cst_37 = arith.constant dense<0.000000e+00> : vector<8x32xf32>
      %55 = tpu.matmul %51, %54, %cst_37 {dimension_numbers = #tpu.dot_dimension_numbers<[1], [0], [0], [1], [0, 0, 1, 1], [], []>} : vector<8x32xbf16>, vector<32x32xbf16>, vector<8x32xf32> -> vector<8x32xf32>
      %c0_38 = arith.constant 0 : index
      %c0_39 = arith.constant 0 : index
      %56 = vector.load %arg8[%c0_38, %c0_39] : memref<1x32xf32, #tpu.memory_space<vmem>>, vector<1x32xf32>
      %57 = vector.broadcast %56 : vector<1x32xf32> to vector<8x32xf32>
      %58 = arith.addf %55, %57 : vector<8x32xf32>
      %c0_40 = arith.constant 0 : index
      %c0_41 = arith.constant 0 : index
      %59 = vector.load %arg9[%c0_40, %c0_41] : memref<32x32xbf16, #tpu.memory_space<vmem>>, vector<32x32xbf16>
      %cst_42 = arith.constant dense<0.000000e+00> : vector<8x32xf32>
      %60 = tpu.matmul %53, %59, %cst_42 {dimension_numbers = #tpu.dot_dimension_numbers<[1], [0], [0], [1], [0, 0, 1, 1], [], []>} : vector<8x32xbf16>, vector<32x32xbf16>, vector<8x32xf32> -> vector<8x32xf32>
      %c0_43 = arith.constant 0 : index
      %c0_44 = arith.constant 0 : index
      %61 = vector.load %arg10[%c0_43, %c0_44] : memref<1x32xf32, #tpu.memory_space<vmem>>, vector<1x32xf32>
      %62 = vector.broadcast %61 : vector<1x32xf32> to vector<8x32xf32>
      %63 = arith.addf %60, %62 : vector<8x32xf32>
      %64 = arith.truncf %58 : vector<8x32xf32> to vector<8x32xbf16>
      %65 = vector.shape_cast %64 : vector<8x32xbf16> to vector<8x4x8xbf16>
      %66 = tpu.transpose %65, [1, 0, 2] : vector<8x4x8xbf16> -> vector<4x8x8xbf16>
      %c0_45 = arith.constant 0 : index
      %c0_46 = arith.constant 0 : index
      %c0_47 = arith.constant 0 : index
      %67 = vector.load %arg14[%c0_45, %c0_46, %c0_47] : memref<4x8x8xbf16, #tpu.memory_space<vmem>>, vector<4x8x8xbf16>
      tpu.vector_store %arg14[%c0_45, %c0_46, %c0_47], %66 {strides = array<i32>} : memref<4x8x8xbf16, #tpu.memory_space<vmem>>, vector<4x8x8xbf16>,
      %68 = arith.truncf %63 : vector<8x32xf32> to vector<8x32xbf16>
      %69 = vector.shape_cast %68 : vector<8x32xbf16> to vector<8x4x8xbf16>
      %70 = tpu.transpose %69, [1, 0, 2] : vector<8x4x8xbf16> -> vector<4x8x8xbf16>
      %c0_48 = arith.constant 0 : index
      %c0_49 = arith.constant 0 : index
      %c0_50 = arith.constant 0 : index
      %71 = vector.load %arg15[%c0_48, %c0_49, %c0_50] : memref<4x8x8xbf16, #tpu.memory_space<vmem>>, vector<4x8x8xbf16>
      tpu.vector_store %arg15[%c0_48, %c0_49, %c0_50], %70 {strides = array<i32>} : memref<4x8x8xbf16, #tpu.memory_space<vmem>>, vector<4x8x8xbf16>,
    } else {
    }
    %c0 = arith.constant 0 : index
    %c0_1 = arith.constant 0 : index
    %c0_2 = arith.constant 0 : index
    %3 = vector.load %arg2[%c0, %c0_1, %c0_2] : memref<1x8x32xbf16, #tpu.memory_space<vmem>>, vector<1x8x32xbf16>
    %4 = vector.shape_cast %3 : vector<1x8x32xbf16> to vector<8x32xbf16>
    %c0_3 = arith.constant 0 : index
    %c0_4 = arith.constant 0 : index
    %5 = vector.load %arg5[%c0_3, %c0_4] : memref<32x32xbf16, #tpu.memory_space<vmem>>, vector<32x32xbf16>
    %cst = arith.constant dense<0.000000e+00> : vector<8x32xf32>
    %6 = tpu.matmul %4, %5, %cst {dimension_numbers = #tpu.dot_dimension_numbers<[1], [0], [0], [1], [0, 0, 1, 1], [], []>} : vector<8x32xbf16>, vector<32x32xbf16>, vector<8x32xf32> -> vector<8x32xf32>
    %c0_5 = arith.constant 0 : index
    %c0_6 = arith.constant 0 : index
    %7 = vector.load %arg6[%c0_5, %c0_6] : memref<1x32xf32, #tpu.memory_space<vmem>>, vector<1x32xf32>
    %8 = vector.broadcast %7 : vector<1x32xf32> to vector<8x32xf32>
    %9 = arith.addf %6, %8 : vector<8x32xf32>
    %10 = arith.truncf %9 : vector<8x32xf32> to vector<8x32xbf16>
    %11 = vector.shape_cast %10 : vector<8x32xbf16> to vector<8x4x8xbf16>
    %12 = tpu.transpose %11, [1, 0, 2] : vector<8x4x8xbf16> -> vector<4x8x8xbf16>
    %cst_7 = arith.constant 0xFF800000 : f32
    %13 = vector.broadcast %cst_7 : f32 to vector<4x8x1xf32>
    %cst_8 = arith.constant 0.000000e+00 : f32
    %14 = vector.broadcast %cst_8 : f32 to vector<4x8x1xf32>
    %cst_9 = arith.constant 0.000000e+00 : f32
    %15 = vector.broadcast %cst_9 : f32 to vector<4x8x8xf32>
    %c0_i32_10 = arith.constant 0 : i32
    %c0_11 = arith.constant 0 : index
    %c0_12 = arith.constant 0 : index
    %c0_13 = arith.constant 0 : index
    %16 = vector.load %arg14[%c0_11, %c0_12, %c0_13] : memref<4x8x8xbf16, #tpu.memory_space<vmem>>, vector<4x8x8xbf16>
    %c0_14 = arith.constant 0 : index
    %c0_15 = arith.constant 0 : index
    %c0_16 = arith.constant 0 : index
    %17 = vector.load %arg15[%c0_14, %c0_15, %c0_16] : memref<4x8x8xbf16, #tpu.memory_space<vmem>>, vector<4x8x8xbf16>
    "tpu.trace_start"() <{level = 10 : i32, message = "hqd,hkd->hqk"}> : () -> ()
    %cst_17 = arith.constant dense<0.000000e+00> : vector<4x8x8xf32>
    %18 = tpu.matmul %12, %16, %cst_17 {dimension_numbers = #tpu.dot_dimension_numbers<[2], [2], [1], [1], [0, 0, 0, 1, 1, 1], [0], [0]>} : vector<4x8x8xbf16>, vector<4x8x8xbf16>, vector<4x8x8xf32> -> vector<4x8x8xf32>
    "tpu.trace_stop"() : () -> ()
    %cst_18 = arith.constant dense<0xFF800000> : vector<4x8xf32>
    %19 = vector.multi_reduction <maximumf>, %18, %cst_18 [2] : vector<4x8x8xf32> to vector<4x8xf32>
    %20 = vector.shape_cast %19 : vector<4x8xf32> to vector<4x8x1xf32>
    %21 = arith.maximumf %13, %20 : vector<4x8x1xf32>
    %22 = arith.subf %13, %21 : vector<4x8x1xf32>
    %23 = math.exp %22 : vector<4x8x1xf32>
    %24 = vector.broadcast %21 : vector<4x8x1xf32> to vector<4x8x8xf32>
    %25 = arith.subf %18, %24 : vector<4x8x8xf32>
    %26 = math.exp %25 : vector<4x8x8xf32>
    %27 = arith.mulf %23, %14 : vector<4x8x1xf32>
    %cst_19 = arith.constant dense<0.000000e+00> : vector<4x8xf32>
    %28 = vector.multi_reduction <add>, %26, %cst_19 [2] : vector<4x8x8xf32> to vector<4x8xf32>
    %29 = vector.shape_cast %28 : vector<4x8xf32> to vector<4x8x1xf32>
    %30 = arith.addf %27, %29 : vector<4x8x1xf32>
    %31 = vector.broadcast %23 : vector<4x8x1xf32> to vector<4x8x8xf32>
    %32 = arith.mulf %31, %15 : vector<4x8x8xf32>
    %33 = arith.truncf %26 : vector<4x8x8xf32> to vector<4x8x8xbf16>
    "tpu.trace_start"() <{level = 10 : i32, message = "hqk,hkv->hqv"}> : () -> ()
    %cst_20 = arith.constant dense<0.000000e+00> : vector<4x8x8xf32>
    %34 = tpu.matmul %33, %17, %cst_20 {dimension_numbers = #tpu.dot_dimension_numbers<[2], [1], [1], [2], [0, 0, 0, 1, 1, 2], [0], [0]>} : vector<4x8x8xbf16>, vector<4x8x8xbf16>, vector<4x8x8xf32> -> vector<4x8x8xf32>
    "tpu.trace_stop"() : () -> ()
    %35 = arith.addf %32, %34 : vector<4x8x8xf32>
    %36 = tpu.reciprocal %30 {approx = true} : vector<4x8x1xf32> -> vector<4x8x1xf32>
    %37 = vector.broadcast %36 : vector<4x8x1xf32> to vector<4x8x8xf32>
    %38 = arith.mulf %35, %37 : vector<4x8x8xf32>
    %39 = arith.truncf %38 : vector<4x8x8xf32> to vector<4x8x8xbf16>
    %40 = tpu.transpose %39, [1, 0, 2] : vector<4x8x8xbf16> -> vector<8x4x8xbf16>
    %41 = vector.shape_cast %40 : vector<8x4x8xbf16> to vector<8x32xbf16>
    %c0_21 = arith.constant 0 : index
    %c0_22 = arith.constant 0 : index
    %42 = vector.load %arg11[%c0_21, %c0_22] : memref<32x32xbf16, #tpu.memory_space<vmem>>, vector<32x32xbf16>
    %cst_23 = arith.constant dense<0.000000e+00> : vector<8x32xf32>
    %43 = tpu.matmul %41, %42, %cst_23 {dimension_numbers = #tpu.dot_dimension_numbers<[1], [0], [0], [1], [0, 0, 1, 1], [], []>} : vector<8x32xbf16>, vector<32x32xbf16>, vector<8x32xf32> -> vector<8x32xf32>
    %c0_24 = arith.constant 0 : index
    %c0_25 = arith.constant 0 : index
    %44 = vector.load %arg12[%c0_24, %c0_25] : memref<1x32xf32, #tpu.memory_space<vmem>>, vector<1x32xf32>
    %45 = vector.broadcast %44 : vector<1x32xf32> to vector<8x32xf32>
    %46 = arith.addf %43, %45 : vector<8x32xf32>
    %c0_26 = arith.constant 0 : index
    %c0_27 = arith.constant 0 : index
    %c0_28 = arith.constant 0 : index
    %47 = vector.load %arg13[%c0_26, %c0_27, %c0_28] : memref<1x8x32xf32, #tpu.memory_space<vmem>>, vector<1x8x32xf32>
    %48 = vector.shape_cast %47 : vector<1x8x32xf32> to vector<8x32xf32>
    %49 = vector.shape_cast %46 : vector<8x32xf32> to vector<1x8x32xf32>
    tpu.vector_store %arg13[%c0_26, %c0_27, %c0_28], %49 {strides = array<i32>} : memref<1x8x32xf32, #tpu.memory_space<vmem>>, vector<1x8x32xf32>,
    return
  }
  func.func @transform_0(%arg0: i32, %arg1: i32) -> (i32, i32, i32) {
    %c0_i32 = arith.constant 0 : i32
    %c0_i32_0 = arith.constant 0 : i32
    return %arg0, %arg1, %c0_i32 : i32, i32, i32
  }
  func.func @transform_1(%arg0: i32, %arg1: i32) -> (i32, i32, i32) {
    %c0_i32 = arith.constant 0 : i32
    %c0_i32_0 = arith.constant 0 : i32
    %c0_i32_1 = arith.constant 0 : i32
    return %arg0, %c0_i32, %c0_i32_0 : i32, i32, i32
  }
  func.func @transform_2(%arg0: i32, %arg1: i32) -> (i32, i32, i32) {
    %c0_i32 = arith.constant 0 : i32
    %c0_i32_0 = arith.constant 0 : i32
    %c0_i32_1 = arith.constant 0 : i32
    return %arg0, %c0_i32, %c0_i32_0 : i32, i32, i32
  }
  func.func @transform_3(%arg0: i32, %arg1: i32) -> (i32, i32) {
    %c0_i32 = arith.constant 0 : i32
    %c0_i32_0 = arith.constant 0 : i32
    %c0_i32_1 = arith.constant 0 : i32
    return %c0_i32, %c0_i32_0 : i32, i32
  }
  func.func @transform_4(%arg0: i32, %arg1: i32) -> (i32, i32) {
    %c0_i32 = arith.constant 0 : i32
    %c0_i32_0 = arith.constant 0 : i32
    %c0_i32_1 = arith.constant 0 : i32
    return %c0_i32, %c0_i32_0 : i32, i32
  }
  func.func @transform_5(%arg0: i32, %arg1: i32) -> (i32, i32) {
    %c0_i32 = arith.constant 0 : i32
    %c0_i32_0 = arith.constant 0 : i32
    %c0_i32_1 = arith.constant 0 : i32
    return %c0_i32, %c0_i32_0 : i32, i32
  }
  func.func @transform_6(%arg0: i32, %arg1: i32) -> (i32, i32) {
    %c0_i32 = arith.constant 0 : i32
    %c0_i32_0 = arith.constant 0 : i32
    %c0_i32_1 = arith.constant 0 : i32
    return %c0_i32, %c0_i32_0 : i32, i32
  }
  func.func @transform_7(%arg0: i32, %arg1: i32) -> (i32, i32) {
    %c0_i32 = arith.constant 0 : i32
    %c0_i32_0 = arith.constant 0 : i32
    %c0_i32_1 = arith.constant 0 : i32
    return %c0_i32, %c0_i32_0 : i32, i32
  }
  func.func @transform_8(%arg0: i32, %arg1: i32) -> (i32, i32) {
    %c0_i32 = arith.constant 0 : i32
    %c0_i32_0 = arith.constant 0 : i32
    %c0_i32_1 = arith.constant 0 : i32
    return %c0_i32, %c0_i32_0 : i32, i32
  }
  func.func @transform_9(%arg0: i32, %arg1: i32) -> (i32, i32) {
    %c0_i32 = arith.constant 0 : i32
    %c0_i32_0 = arith.constant 0 : i32
    %c0_i32_1 = arith.constant 0 : i32
    return %c0_i32, %c0_i32_0 : i32, i32
  }
  func.func @transform_10(%arg0: i32, %arg1: i32) -> (i32, i32) {
    %c0_i32 = arith.constant 0 : i32
    %c0_i32_0 = arith.constant 0 : i32
    %c0_i32_1 = arith.constant 0 : i32
    return %c0_i32, %c0_i32_0 : i32, i32
  }
  func.func @transform_11(%arg0: i32, %arg1: i32) -> (i32, i32, i32) {
    %c0_i32 = arith.constant 0 : i32
    %c0_i32_0 = arith.constant 0 : i32
    return %arg0, %arg1, %c0_i32 : i32, i32, i32
  }
}

</mosaic_0001>

<bundles_post_ra>
// kernel: tpu_custom_call.1
= control target key start
LH: loop header
LB: loop body
LE: loop exit
PB: predicated region body
PF: predicated region fallthrough
CT: control target
= control target key end

     0   :  { %s3410_s0 = inlined_call_operand.hbm [shape: bf16[2,8,32], index: 0, kind: input, shape index: {}]   ;;  %s3411_s1 = inlined_call_operand.hbm [shape: bf16[2,8,32], index: 1, kind: input, shape index: {}]   ;;  %s3412_s2 = inlined_call_operand.hbm [shape: bf16[2,8,32], index: 2, kind: input, shape index: {}]   ;;  %s3413_s3 = inlined_call_operand.hbm [shape: bf16[32,32], index: 3, kind: input, shape index: {}]   ;;  %s3414_s4 = inlined_call_operand.hbm [shape: f32[1,32], index: 4, kind: input, shape index: {}]   ;;  %s3415_s5 = inlined_call_operand.hbm [shape: bf16[32,32], index: 5, kind: input, shape index: {}]   ;;  %s3416_s6 = inlined_call_operand.hbm [shape: f32[1,32], index: 6, kind: input, shape index: {}]   ;;  %s3417_s7 = inlined_call_operand.hbm [shape: bf16[32,32], index: 7, kind: input, shape index: {}]   ;;  %s3418_s8 = inlined_call_operand.hbm [shape: f32[1,32], index: 8, kind: input, shape index: {}]   ;;  %s3419_s9 = inlined_call_operand.vmem [shape: bf16[32,32], index: 9, kind: input, shape index: {}]   ;;  %s3420_s10 = inlined_call_operand.vmem [shape: f32[1,32], index: 10, kind: input, shape index: {}]   ;;  %s3421_s11 = inlined_call_operand.hbm [shape: f32[2,8,32], index: 11, kind: output, shape index: {}]  }
   0x1   :  { %3437 = sst [smem:[#allocation32_spill]] %s3413_s3 }
   0x2   :  { %3438 = sst [smem:[#allocation33_spill]] %s3415_s5 }
   0x3   :  { %3439 = sst [smem:[#allocation34_spill]] %s3417_s7 }
   0x4   :  { %3440 = sst [smem:[#allocation35_spill]] %s3420_s10 }
   0x5   :  { %3441 = sst [smem:[#allocation36_spill]] %s3421_s11 }
   0x6   :  { %16 = vsyncpa [#allocation5], 0 }
   0x7   :  { %18 = vsyncpa [#allocation5 + $0x1], 0 }
   0x8   :  { %19 = vsyncpa [#allocation8], 0 }
   0x9   :  { %21 = vsyncpa [#allocation8 + $0x1], 0 }
   0xa   :  { %22 = vsyncpa [#allocation11], 0 }
   0xb   :  { %23 = vsyncpa [#allocation14], 0 }
   0xc   :  { %24 = vsyncpa [#allocation17], 0 }
   0xd   :  { %25 = vsyncpa [#allocation6], 0 }
   0xe   :  { %27 = vsyncpa [#allocation6 + $0x1], 0  ;;  %s2953_s17 = smov 0   ;;  %s2955_s18 = smov 0  }
   0xf   :  { %s2957_s19 = smov 0   ;;  %s2959_s20 = smov 0  }
  0x10   :  { %s2961_s21 = smov 0   ;;  %s2963_s22 = smov 0  }
  0x11 LB: > { %3442 = sst [smem:[#allocation26_spill]] %s2848_s17  ;;  %s2984_s23 = sadd.s32 4294967295, %s2868_s22   ;;  %s2868_s22 = sphi %s2963_s22, %s33_s22   ;;  %s2864_s21 = sphi %s2961_s21, %s3482_s21   ;;  %s2860_s20 = sphi %s2959_s20, %s3481_s20   ;;  %s2856_s19 = sphi %s2957_s19, %s3485_s19   ;;  %s2852_s18 = sphi %s2955_s18, %s3484_s18   ;;  %s2848_s17 = sphi %s2953_s17, %s3483_s17  }
  0x12   : > { %3443 = sst [smem:[#allocation27_spill]] %s2864_s21  ;;  %p2193_p0 = scmp.ge.s32.totalorder %s2868_s22, 1 }
  0x13   : > { %3444 = sst [smem:[#allocation28_spill]] %s2868_s22  ;;  %p3422_p1 = scmp.eq.s32.totalorder %s2984_s23, 0 }
  0x14   : > { %p326_p2 = scmp.lt.s32.totalorder %s2868_s22, 3  ;;  %s2870_s25 = smov [#allocation10]  }
  0x15   : > { %s338_s26 = sshll.u32 %s2870_s25, 4  ;;  %s2871_s28 = smov [#allocation13]   ;;  %s339_s26 = int_to_ptr.vmem [resolvable:$true] %s338_s26 }
  0x16   : > { %p2989_p3 = pnand %p2193_p0, %p326_p2  ;;  %s362_s29 = sshll.u32 %s2871_s28, 4  ;;  %s363_s29 = int_to_ptr.vmem [resolvable:$true] %s362_s29 }
  0x17   : > { %s2872_s30 = smov [#allocation16]   ;;  %s2543_s14 = scalar_lea.vmem %s339_s26, 256 }
  0x18   : > { %s3445_s24 = scalar_select %p2989_p3, 1, 0 }
  0x19   : > { %p2386_p4 = pneg %p2989_p3  ;;  %s386_s12 = sshll.u32 %s2872_s30, 4  ;;  %s387_s12 = int_to_ptr.vmem [resolvable:$true] %s386_s12 }
  0x1a   : > { %p2544_p8 = scmp.ne.s32.totalorder %s339_s26, %s2543_s14  ;;  %p2551_p11 = scmp.lt.s32.totalorder %s339_s26, %s339_s26 }
  0x1b   : > { %p2998_p6 = pnand %p2386_p4, %p3422_p1  ;;  %p2552_p12 = scmp.lt.s32.totalorder %s2543_s14, %s2543_s14 }
  0x1d   : > { %s3446_s27 = scalar_select %p2998_p6, 1, 0 }
  0x1e   : > { %p3004_p7 = pneg %p2998_p6  ;;  %p2553_p13 = por %p2552_p12, %p2551_p11 }
  0x20   : > { %p2546_p9 = pnand %p2544_p8, %p3004_p7 }
  0x22   : > { %p2547_p10 = pneg %p2546_p9 }
  0x24   : > { %p2554_p0 = pnand %p2553_p13, %p2547_p10 }
  0x26   : > { %2557 = shalt.err (!%p2554_p0)
}
  0x27   : > { %s2873_s15 = smov 64   ;;  %s2874_s16 = smov 4  }
  0x28   : > { %s3448_s3 = sld [smem:[#allocation32_spill]]  ;;  %s2569_s30 = scalar_lea.vmem %s363_s29, 256 }
  0x29   : > { %p2570_p2 = scmp.ne.s32.totalorder %s363_s29, %s2569_s30  ;;  %p2577_p9 = scmp.lt.s32.totalorder %s363_s29, %s363_s29 }
  0x2a   : > { %p2578_p5 = scmp.lt.s32.totalorder %s2569_s30, %s2569_s30 }
  0x2b   : > { %p2572_p4 = pnand %p2570_p2, %p3004_p7 }
  0x2c   : > { %p2579_p1 = por %p2578_p5, %p2577_p9 }
  0x2d   : > { %p2573_p8 = pneg %p2572_p4 }
  0x2e   : > { %2389 = dma.hbm_to_vmem [thread:$0]  (!%p2998_p6), %s3448_s3, 256, %s339_s26, [#allocation11], %s2873_s15, %s2873_s15, %s2874_s16  }
  0x2f   : > { %p2580_p11 = pnand %p2579_p1, %p2573_p8 }
  0x31   : > { %2583 = shalt.err (!%p2580_p11)
}
  0x32   : > { %s3449_s5 = sld [smem:[#allocation33_spill]]  ;;  %s2595_s25 = scalar_lea.vmem %s387_s12, 256 }
  0x33   : > { %p2596_p10 = scmp.ne.s32.totalorder %s387_s12, %s2595_s25  ;;  %p2603_p0 = scmp.lt.s32.totalorder %s387_s12, %s387_s12 }
  0x34   : > { %p2604_p2 = scmp.lt.s32.totalorder %s2595_s25, %s2595_s25 }
  0x35   : > { %p2598_p12 = pnand %p2596_p10, %p3004_p7 }
  0x36   : > { %p2605_p4 = por %p2604_p2, %p2603_p0 }
  0x37   : > { %p2599_p13 = pneg %p2598_p12 }
  0x38   : > { %2395 = dma.hbm_to_vmem [thread:$0]  (!%p2998_p6), %s3449_s5, 256, %s363_s29, [#allocation14], %s2873_s15, %s2873_s15, %s2874_s16  }
  0x39   : > { %p2606_p3 = pnand %p2605_p4, %p2599_p13 }
  0x3b   : > { %2609 = shalt.err (!%p2606_p3)
}
  0x3c   : > { %s3450_s7 = sld [smem:[#allocation34_spill]]  ;;  %s2192_s11 = sadd.s32 4294967294, %s2868_s22  }
  0x3d   : > { %s45_s29 = sadd.s32 1, %s2864_s21  ;;  %s54_s30 = sadd.s32 1, %s2856_s19 }
  0x3e   : > { %p47_p1 = scmp.ge.s32.totalorder %s45_s29, 2  ;;  %p61_p3 = scmp.ne.s32.totalorder %s2856_s19, %s2852_s18 }
  0x3f   : > { %p62_p5 = scmp.eq.s32.totalorder %s2868_s22, 0  ;;  %p67_p8 = scmp.ne.s32.totalorder %s2852_s18, %s2848_s17 }
  0x40   : > { %s3487_s29 = smov (%p47_p1, %s45_s29), 0  ;;  %p3453_p11 = scmp.eq.s32.totalorder %s2984_s23, 0 }
  0x41   : > { %3451 = sst [smem:[#allocation29_spill]] %s3487_s29  ;;  %p3039_p9 = por %p62_p5, %p61_p3 }
  0x42   : > { %2401 = dma.hbm_to_vmem [thread:$0]  (!%p2998_p6), %s3450_s7, 256, %s387_s12, [#allocation17], %s2873_s15, %s2873_s15, %s2874_s16  }
  0x43   : > { %p3045_p10 = por %p3453_p11, %p67_p8  ;;  %s49_s15 = ssub.s32 %s2864_s21, %s3487_s29 }
  0x44   : > { %p313_p12 = scmp.eq.s32.totalorder %s2984_s23, 1  ;;  %p52_p13 = scmp.eq.s32.totalorder %s49_s15, 0 }
  0x45   : > { %s3454_s12 = scalar_select %p3045_p10, 1, 0 }
  0x46   : > { %p319_p0 = scmp.eq.s32.totalorder %s2192_s11, 1  ;;  %p3052_p2 = por %p313_p12, %p61_p3 }
  0x47   : > { %p2425_p4 = scmp.lt.s32.totalorder %s2868_s22, 2  ;;  %s3427_s28 = sand.u32 1, %s2856_s19  }
  0x48   : > { %s3455_s16 = scalar_select %p3052_p2, 1, 0 }
  0x49   : > { %s3058_s25 = scalar_select %p52_p13, %s2856_s19, %s54_s30  }
  0x4a   : > { %p3060_p1 = por %p319_p0, %p67_p8  ;;  %s3067_s3 = sshll.u32 %s3427_s28, 2 }
  0x4b   : > { %3456 = sst [smem:[#allocation30_spill]] %s3058_s25  ;;  %s3070_s5 = sshll.u32 %s2864_s21, 6 }
  0x4c   : > { %s3457_s26 = scalar_select %p3060_p1, 1, 0 }
  0x4d   : > { %p3074_p3 = pnand %p2425_p4, %p3039_p9  ;;  %s436_s30 = sand.u32 1, %s2868_s22  }
  0x4e   : > { %3458 = sst [smem:[#allocation31_spill]] %s3457_s26  ;;  %s445_s29 = scalar_lea.hbm %s3411_s1, %s3070_s5 }
  0x4f   : > { %s440_s25 = scalar_lea.vmem [#allocation7], %s3067_s3  ;;  %s2875_s28 = smov [#allocation12]  }
  0x50   : > { %s447_s26 = sshll.u32 %s440_s25, 4  ;;  %s352_s17 = sshll.u32 %s2875_s28, 4  ;;  %s448_s26 = int_to_ptr.vmem [resolvable:$true] %s447_s26  ;;  %s353_s17 = int_to_ptr.vmem [resolvable:$true] %s352_s17 }
  0x51   : > { %s3084_s21 = scalar_lea.sflag [#allocation8], %s436_s30  ;;  %p3432_p5 = pneg %p3074_p3 }
  0x52   : > { %s2623_s14 = scalar_lea.vmem %s448_s26, 64  ;;  %s2876_s22 = smov [#allocation7]  }
  0x53   : > { %p2624_p8 = scmp.ne.s32.totalorder %s448_s26, %s2623_s14  ;;  %s2628_s10 = sshll.u32 %s2876_s22, 4  ;;  %s2629_s10 = int_to_ptr.vmem [resolvable:$false] %s2628_s10 }
  0x54   : > { %s2630_s7 = scalar_lea.vmem %s2629_s10, 128  ;;  %p2631_p12 = scmp.lt.s32.totalorder %s448_s26, %s2629_s10 }
  0x55   : > { %p2626_p9 = pnand %p2624_p8, %p3432_p5  ;;  %p2632_p13 = scmp.lt.s32.totalorder %s2630_s7, %s2623_s14 }
  0x57   : > { %p2627_p11 = pneg %p2626_p9  ;;  %p2633_p0 = por %p2632_p13, %p2631_p12 }
  0x59   : > { %p2634_p4 = pnand %p2633_p0, %p2627_p11 }
  0x5b   : > { %2637 = shalt.err (!%p2634_p4)
}
  0x5c   : > { %2411 = dma.hbm_to_vmem [thread:$0]  (!%p3074_p3), %s445_s29, 64, %s448_s26, %s3084_s21  }
  0x5d   : > { %s2649_s25 = scalar_lea.vmem %s353_s17, 16  ;;  %s2656_s28 = scalar_lea.vmem %s353_s17, 32 }
  0x5e   : > { %p2650_p1 = scmp.ne.s32.totalorder %s353_s17, %s2649_s25  ;;  %p2657_p5 = scmp.lt.s32.totalorder %s353_s17, %s353_s17 }
  0x5f   : > { %p2658_p2 = scmp.lt.s32.totalorder %s2656_s28, %s2649_s25 }
  0x60   : > { %p2652_p8 = pnand %p2650_p1, %p3004_p7 }
  0x61   : > { %p2659_p10 = por %p2658_p2, %p2657_p5 }
  0x62   : > { %p2653_p9 = pneg %p2652_p8 }
  0x64   : > { %p2660_p6 = pnand %p2659_p10, %p2653_p9 }
  0x66   : > { %2663 = shalt.err (!%p2660_p6)
}
  0x67   : > { %p3460_p11 = scmp.ne.s32.totalorder %s3446_s27, 0  ;;  %s2877_s29 = smov [#allocation15]  }
  0x68   : > { %s376_s26 = sshll.u32 %s2877_s29, 4  ;;  %s2878_s30 = smov [#allocation18]   ;;  %s377_s26 = int_to_ptr.vmem [resolvable:$true] %s376_s26 }
  0x69   : > { %2392 = dma.hbm_to_vmem [thread:$0]  (!%p3460_p11), %s3414_s4, 16, %s353_s17, [#allocation11]  }
  0x6a   : > { %s400_s15 = sshll.u32 %s2878_s30, 4  ;;  %s2675_s14 = scalar_lea.vmem %s377_s26, 16  ;;  %s401_s15 = int_to_ptr.vmem [resolvable:$true] %s400_s15 }
  0x6b   : > { %p2676_p1 = scmp.ne.s32.totalorder %s377_s26, %s2675_s14  ;;  %s2682_s7 = scalar_lea.vmem %s377_s26, 32 }
  0x6c   : > { %p2683_p10 = scmp.lt.s32.totalorder %s377_s26, %s377_s26  ;;  %p2684_p6 = scmp.lt.s32.totalorder %s2682_s7, %s2675_s14 }
  0x6d   : > { %p2678_p12 = pnand %p2676_p1, %p3004_p7 }
  0x6e   : > { %p2685_p2 = por %p2684_p6, %p2683_p10 }
  0x6f   : > { %p2679_p13 = pneg %p2678_p12 }
  0x71   : > { %p2686_p5 = pnand %p2685_p2, %p2679_p13 }
  0x73   : > { %2689 = shalt.err (!%p2686_p5)
}
  0x74   : > { %2398 = dma.hbm_to_vmem [thread:$0]  (!%p3460_p11), %s3416_s6, 16, %s377_s26, [#allocation14]  }
  0x75   : > { %s2701_s28 = scalar_lea.vmem %s401_s15, 16  ;;  %s2708_s10 = scalar_lea.vmem %s401_s15, 32 }
  0x76   : > { %p2702_p0 = scmp.ne.s32.totalorder %s401_s15, %s2701_s28  ;;  %p2709_p9 = scmp.lt.s32.totalorder %s401_s15, %s401_s15 }
  0x77   : > { %p2710_p1 = scmp.lt.s32.totalorder %s2708_s10, %s2701_s28 }
  0x78   : > { %p2704_p4 = pnand %p2702_p0, %p3004_p7 }
  0x79   : > { %p2711_p12 = por %p2710_p1, %p2709_p9 }
  0x7a   : > { %p2705_p8 = pneg %p2704_p4 }
  0x7c   : > { %p2712_p10 = pnand %p2711_p12, %p2705_p8 }
  0x7e   : > { %2715 = shalt.err (!%p2712_p10)
}
  0x7f   : > { %2404 = dma.hbm_to_vmem [thread:$0]  (!%p3460_p11), %s3418_s8, 16, %s401_s15, [#allocation17]  }
  0x80   : > { %s427_s30 = scalar_lea.hbm %s3410_s0, %s3070_s5  ;;  %s421_s14 = scalar_lea.vmem [#allocation4], %s3067_s3 }
  0x81   : > { %s429_s7 = sshll.u32 %s421_s14, 4  ;;  %s463_s27 = scalar_lea.hbm %s3412_s2, %s3070_s5  ;;  %s430_s7 = int_to_ptr.vmem [resolvable:$true] %s429_s7 }
  0x82   : > { %s3461_s28 = sand.u32 1, %s2856_s19   ;;  %s2729_s22 = scalar_lea.vmem %s430_s7, 64 }
  0x83   : > { %s418_s10 = scalar_lea.sflag [#allocation5], %s3461_s28  ;;  %p2730_p7 = scmp.ne.s32.totalorder %s430_s7, %s2729_s22 }
  0x84   : > { %p3462_p13 = pneg %p3074_p3  ;;  %s2879_s15 = smov [#allocation4]  }
  0x85   : > { %s2734_s29 = sshll.u32 %s2879_s15, 4  ;;  %s2735_s29 = int_to_ptr.vmem [resolvable:$false] %s2734_s29 }
  0x86   : > { %p2732_p6 = pnand %p2730_p7, %p3462_p13  ;;  %s2736_s13 = scalar_lea.vmem %s2735_s29, 128 }
  0x87   : > { %p2737_p11 = scmp.lt.s32.totalorder %s430_s7, %s2735_s29  ;;  %p2738_p5 = scmp.lt.s32.totalorder %s2736_s13, %s2729_s22 }
  0x88   : > { %p2733_p2 = pneg %p2732_p6 }
  0x89   : > { %p2739_p0 = por %p2738_p5, %p2737_p11 }
  0x8b   : > { %p2740_p4 = pnand %p2739_p0, %p2733_p2 }
  0x8d   : > { %2743 = shalt.err (!%p2740_p4)
}
  0x8e   : > { %2408 = dma.hbm_to_vmem [thread:$0]  (!%p3074_p3), %s427_s30, 64, %s430_s7, %s418_s10  }
  0x8f   : > { %s458_s26 = scalar_lea.vmem [#allocation9], %s3067_s3  ;;  %p3463_p9 = pmov %p3462_p13 }
  0x90   : > { %s465_s14 = sshll.u32 %s458_s26, 4  ;;  %s2880_s17 = smov [#allocation9]   ;;  %s466_s14 = int_to_ptr.vmem [resolvable:$true] %s465_s14 }
  0x91   : > { %s2757_s25 = scalar_lea.vmem %s466_s14, 64  ;;  %s2762_s28 = sshll.u32 %s2880_s17, 4  ;;  %s2763_s28 = int_to_ptr.vmem [resolvable:$false] %s2762_s28 }
  0x92   : > { %p2758_p8 = scmp.ne.s32.totalorder %s466_s14, %s2757_s25  ;;  %s2764_s22 = scalar_lea.vmem %s2763_s28, 128 }
  0x93   : > { %p2765_p10 = scmp.lt.s32.totalorder %s466_s14, %s2763_s28  ;;  %p2766_p7 = scmp.lt.s32.totalorder %s2764_s22, %s2757_s25 }
  0x94   : > { %p2760_p1 = pnand %p2758_p8, %p3463_p9 }
  0x95   : > { %p2767_p13 = por %p2766_p7, %p2765_p10 }
  0x96   : > { %p2761_p12 = pneg %p2760_p1 }
  0x98   : > { %p2768_p6 = pnand %p2767_p13, %p2761_p12 }
  0x9a   : > { %2771 = shalt.err (!%p2768_p6)
}
  0x9b   : > { %2414 = dma.hbm_to_vmem [thread:$0]  (!%p3074_p3), %s463_s27, 64, %s466_s14, %s3084_s21  }
  0x9c   : > { %p3464_p2 = scmp.ne.s32.totalorder %s3445_s24, 0 }
  0x9d   : > { %s3146_s7 = sand.u32 (!%p3464_p2), 1, %s2852_s18   ;;  %p3465_p11 = scmp.ne.s32.totalorder (!%p3464_p2), %s3454_s12, 0 }
  0x9e   : > { %474 = sbr.rel (%p3464_p2) target bundleno = 1456 (0x5b0), region = 64  ;;  %s3149_s10 = sshll.u32 (!%p3464_p2), %s3146_s7, 2 }
  0x9f   : > { %s477_s11 = scalar_lea.sflag (!%p3464_p2), [#allocation5], %s3146_s7  ;;  %s480_s15 = scalar_lea.vmem (!%p3464_p2), [#allocation4], %s3149_s10 }
  0xa3   : > { %2823 = dma.done.wait (%p3465_p11), %s477_s11, 64  }
  0xa4   : > { %2825 = vsyncadd (%p3465_p11), %s477_s11, 4294967232  ;;  %s485_s5 = sand.u32 1, %s2984_s23   ;;  %s489_s24 = scalar_lea.vmem [#allocation7], %s3149_s10 }
  0xa5   : > { %s486_s21 = scalar_lea.sflag [#allocation8], %s485_s5 }
  0xa6   : > { %2827 = dma.done.wait (%p3465_p11), %s486_s21, 128  }
  0xa7   : > { %2829 = vsyncadd (%p3465_p11), %s486_s21, 4294967168  ;;  %s498_s27 = scalar_lea.vmem [#allocation9], %s3149_s10  ;;  %p3466_p3 = scmp.eq.s32.totalorder %s2984_s23, 0 }
  0xa9   : > { %2831 = dma.done.wait (%p3466_p3), [#allocation11], 272   ;;  %p3467_p5 = pmov %p3466_p3 }
  0xaa   : > { %p3468_p0 = pmov %p3466_p3 }
  0xab   : > { %2833 = vsyncadd (%p3467_p5), [#allocation11], 4294967024 }
  0xac   : > { %2835 = dma.done.wait (%p3468_p0), [#allocation14], 272   ;;  %p3469_p4 = pmov %p3468_p0 }
  0xad   : > { %p3470_p8 = pmov %p3468_p0 }
  0xae   : > { %2837 = vsyncadd (%p3469_p4), [#allocation14], 4294967024 }
  0xaf   : > { %2839 = dma.done.wait (%p3470_p8), [#allocation17], 272   ;;  %p3471_p9 = pmov %p3468_p0 }
  0xb0   : > { %v2881_v0 = vmov 0.0   ;;  %vm2882_vm0 = vmmov 0   ;;  %v2500_v1 = vld [vmem:[#allocation13 + $0x8] sm:$0xff]   ;;  %v2501_v2 = vld [vmem:[#allocation13] sm:$0xff]   ;;  %vm601_vm1 = vcmask 261120   ;;  %v2502_v4 = vld [vmem:[#allocation10 + $0x8] sm:$0xff]   ;;  %v722_v33 = vlaneseq }
  0xb1   : > { %2841 = vsyncadd (%p3471_p9), [#allocation17], 4294967024  ;;  %2274 = vmatprep.subr.bf16.mxu0 %v2881_v0  ;;  %2278 = vmatprep.mubr.msk.bf16.mxu0 %vm2882_vm0, %v2881_v0  ;;  %v576_v3 = vld [vmem:[%s489_s24] sm:$0xf]  ;;  %v2503_v6 = vld [vmem:[#allocation10] sm:$0xff]   ;;  %s2883_s23 = smov 104  }
  0xb2   : > { %2282 = vmatprep.subr.bf16.mxu1 %v2881_v0  ;;  %2286 = vmatprep.mubr.msk.bf16.mxu1 %vm2882_vm0, %v2881_v0  ;;  %v2504_v5 = vld [vmem:[#allocation16 + $0x8] sm:$0xff]   ;;  %v2505_v8 = vld [vmem:[#allocation16] sm:$0xff]   ;;  %v577_v9 = vld [vmem:[%s498_s27] sm:$0xf]  ;;  %s2884_s12 = smov 120   ;;  %s2885_s29 = smov 112  }
  0xb3   : > { %2275 = vmatpush3.bf16.msra.mxu0 %v2500_v1  ;;  %2283 = vmatpush3.bf16.msra.mxu1 %v2504_v5  ;;  %v1066_v7 = vld [vmem:[%s480_s15] sm:$0xf]  ;;  %v2218_v10 = vld [vmem:[#allocation15] ss:$0 sm:$0xff]  ;;  %v2226_v17 = vld [vmem:[#allocation12] ss:$0 sm:$0xff] }
  0xb4   : > { %2276 = vmatprep.subr.bf16.mxu0 %v2881_v0  ;;  %2284 = vmatprep.subr.bf16.mxu1 %v2881_v0  ;;  %v2222_v24 = vld [vmem:[#allocation18] ss:$0 sm:$0xff]  ;;  %v2886_v31 = vmov 1983009808   ;;  %v2887_v34 = vmov 1934713408  }
  0xb5   : > { %v720_v32 = vunpack.c.l.s4 %v2886_v31  ;;  %v737_v35 = vunpack.c.l.s4 %v2887_v34  ;;  %v723_v37 = vshrl.u32 %v722_v33, 7  ;;  %v2888_v52 = vmov 0   ;;  %s2889_s17 = smov 8   ;;  %s2890_s28 = smov 16  }
  0xb6   : > { %vm884_vm2 = vcmask 60416   ;;  %vm1311_vm3 = vcmask 64512   ;;  %vm1559_vm4 = vcmask 1043456   ;;  %s2891_s22 = smov 24   ;;  %vm1924_vm5 = vcmask 130048   ;;  %s2217_s3 = sshll.u32 %s3146_s7, 3 }
  0xb7   : > { %2277 = vmatpush3.bf16.msra.mxu0 %v2501_v2  ;;  %2285 = vmatpush3.bf16.msra.mxu1 %v2505_v8  ;;  %v721_v36 = vunpack.c.0.s8 %v720_v32  ;;  %v738_v38 = vunpack.c.0.s8 %v737_v35  ;;  %vm1927_vm6 = vcmask 195584   ;;  %s3472_s11 = sld [smem:[#allocation35_spill]]  ;;  %s2243_s15 = sshll.u32 %s2860_s20, 7 }
  0xb8   : > { %2290 = vmatprep.subr.bf16.mxu0 %v2881_v0  ;;  %2298 = vmatprep.subr.bf16.mxu1 %v2881_v0  ;;  %s570_s5 = scalar_lea.vmem [#allocation19], %s2217_s3  ;;  %p3474_p12 = scmp.ne.s32.totalorder %s3455_s16, 0 }
  0xb9   : > { %v3206_v39 = vsub.s32 %v721_v36, %v723_v37  ;;  %v3209_v43 = vsub.s32 %v738_v38, %v723_v37  ;;  %s2011_s21 = sshll.u32 %s570_s5, 4  ;;  %s2892_s13 = smov [#allocation19]   ;;  %s3363_s21 = int_to_ptr.vmem [resolvable:$true] %s2011_s21 }
  0xba   : > { %2279 = vmatmul.mubr.msk.bf16.vlgmr.msra.gmra.mxu0 %vm601_vm1, %v576_v3  ;;  %2287 = vmatmul.mubr.msk.bf16.vlgmr.msra.gmra.mxu1 %vm601_vm1, %v577_v9  ;;  %s2772_s20 = scalar_lea.vmem %s3363_s21, 128  ;;  %s2776_s26 = sshll.u32 %s2892_s13, 4  ;;  %s2777_s26 = int_to_ptr.vmem [resolvable:$false] %s2776_s26 }
  0xbb   : > { %2291 = vmatpush3.bf16.msra.mxu0 %v2502_v4  ;;  %2294 = vmatprep.mubr.msk.bf16.mxu0 %vm2882_vm0, %v2881_v0  ;;  %p2773_p1 = scmp.ne.s32.totalorder %s3363_s21, %s2772_s20  ;;  %s2778_s14 = scalar_lea.vmem %s2777_s26, 256 }
  0xbc   : > { %2292 = vmatprep.subr.bf16.mxu0 %v2881_v0  ;;  %2300 = vmatprep.mubr.msk.bf16.mxu1 %vm2882_vm0, %v2881_v0  ;;  %p2779_p13 = scmp.lt.s32.totalorder %s3363_s21, %s2777_s26  ;;  %p2780_p6 = scmp.lt.s32.totalorder %s2778_s14, %s2772_s20 }
  0xbd   : > { %p2774_p10 = pnand %p2773_p1, %p3474_p12 }
  0xbe   : > { %p2781_p2 = por %p2780_p6, %p2779_p13 }
  0xbf   : > { %2293 = vmatpush3.bf16.msra.mxu0 %v2503_v6  ;;  %p2775_p7 = pneg %p2774_p10 }
  0xc0   : > { %2304 = vmatprep.subr.bf16.mxu0 %v2881_v0 }
  0xc1   : > { %p2782_p11 = pnand %p2781_p2, %p2775_p7 }
  0xc2   : > { %2295 = vmatmul.mubr.msk.bf16.vlgmr.msra.gmra.mxu0 %vm601_vm1, %v1066_v7 }
  0xc3   : > { %2306 = vmatprep.mubr.msk.bf16.mxu0 %vm2882_vm0, %v2881_v0 }
 0x17a   : > { %v639_v11 = vpop.f32.mrf.mxu0  ;;  %v705_v25 = vpop.f32.mrf.mxu1 }
 0x17b   : > { %v640_v12 = vadd.f32 %v2218_v10, %v639_v11  ;;  %v706_v26 = vadd.f32 %v2222_v24, %v705_v25 }
 0x17c   : > { %v2280_v13 = vpop.f32.mrf.mxu0  ;;  %v2288_v27 = vpop.f32.mrf.mxu1 }
 0x17d   : > { %v711_v14 = vpack.c.bf16 %v640_v12, %v640_v12  ;;  %v3201_v28 = vpack.c.bf16 %v706_v26, %v706_v26 }
 0x17e   : > { %v642_v15 = vpop.f32.mrf.mxu0  ;;  %v708_v29 = vpop.f32.mrf.mxu1 }
 0x17f   : > { %717 = vrot.lane.b32.xlu1 %v711_v14, %s2883_s23  ;;  %713 = vrot.lane.b32.xlu0 %v711_v14, %s2884_s12  ;;  %v725_v51 = vrot.slane %v711_v14, %v3206_v39 }
 0x180   : > { %v2281_v16 = vpop.f32.mrf.mxu0  ;;  %v2289_v30 = vpop.f32.mrf.mxu1 }
 0x182   : > { %v1128_v18 = vpop.f32.mrf.mxu0 }
 0x183   : > { %v1129_v19 = vadd.f32 %v2226_v17, %v1128_v18  ;;  %715 = vrot.lane.b32.xlu0 %v711_v14, %s2885_s29 }
 0x184   : > { %v2296_v20 = vpop.f32.mrf.mxu0 }
 0x185   : > { %v1134_v21 = vpack.c.bf16 %v1129_v19, %v1129_v19 }
 0x186   : > { %v1131_v22 = vpop.f32.mrf.mxu0 }
 0x187   : > { %1138 = vrot.lane.b32.xlu0 %v1134_v21, %s2885_s29  ;;  %1136 = vrot.lane.b32.xlu1 %v1134_v21, %s2884_s12  ;;  %v1148_v58 = vrot.slane %v1134_v21, %v3206_v39 }
 0x188   : > { %v2297_v23 = vpop.f32.mrf.mxu0 }
 0x18b   : > { %1140 = vrot.lane.b32.xlu1 %v1134_v21, %s2883_s23  ;;  %891 = vrot.lane.b32.xlu0 %v3201_v28, %s2884_s12 }
 0x18f   : > { %893 = vrot.lane.b32.xlu1 %v3201_v28, %s2885_s29  ;;  %895 = vrot.lane.b32.xlu0 %v3201_v28, %s2883_s23  ;;  %s3473_s23 = sld [smem:[#allocation36_spill]]  ;;  %s1997_s29 = scalar_lea.sflag [#allocation6], %s3146_s7 }
 0x195   : > { %s3361_s12 = scalar_lea.hbm %s3473_s23, %s2243_s15 }
 0x1f1   : > { %v718_v40 = vpop.permute.xlu1 %717  ;;  %v714_v41 = vpop.permute.xlu0 %713 }
 0x1f2   : > { %v767_v42 = vrot.slane %v718_v40, %v3206_v39  ;;  %v759_v44 = vrot.slane %v714_v41, %v3206_v39 }
 0x1f4   : > { %v768_v45 = vcombine.low %v759_v44, %v767_v42  ;;  %v769_v46 = vcombine.high %v759_v44, %v767_v42 }
 0x1f5   : > { %v716_v47 = vpop.permute.xlu0 %715 }
 0x1f6   : > { %v776_v48 = vrot.slane %v768_v45, %v3209_v43  ;;  %v783_v49 = vrot.slane %v769_v46, %v3209_v43  ;;  %v733_v50 = vrot.slane %v716_v47, %v3206_v39 }
 0x1f8   : > { %v784_v53 = vcombine.high %v776_v48, %v2888_v52  ;;  %v734_v54 = vcombine.low %v725_v51, %v733_v50  ;;  %v735_v55 = vcombine.high %v725_v51, %v733_v50  ;;  %v785_v57 = vcombine.high %v783_v49, %v2888_v52 }
 0x1f9   : > { %v1139_v56 = vpop.permute.xlu0 %1138  ;;  %v1137_v60 = vpop.permute.xlu1 %1136  ;;  %v791_v61 = vshrl.u32 %v776_v48, 16  ;;  %v807_v2 = vshrl.u32 %v783_v49, 16 }
 0x1fa   : > { %v1156_v59 = vrot.slane %v1139_v56, %v3206_v39  ;;  %v742_v62 = vrot.slane %v734_v54, %v3209_v43  ;;  %v749_v63 = vrot.slane %v735_v55, %v3209_v43  ;;  %v799_v1 = vshrl.u32 %v784_v53, 16 }
 0x1fb   : > { %v815_v9 = vshrl.u32 %v785_v57, 16  ;;  %v1182_v24 = vrot.slane %v1137_v60, %v3206_v39 }
 0x1fc   : > { %v1157_v3 = vcombine.low %v1148_v58, %v1156_v59  ;;  %v1158_v4 = vcombine.high %v1148_v58, %v1156_v59  ;;  %v750_v5 = vcombine.high %v742_v62, %v2888_v52  ;;  %v751_v6 = vcombine.high %v749_v63, %v2888_v52 }
 0x1fd   : > { %v788_v7 = vpack.i.b16 %v776_v48, %v742_v62  ;;  %v790_v8 = vshrl.u32 %v742_v62, 16  ;;  %v804_v10 = vpack.i.b16 %v783_v49, %v749_v63  ;;  %v806_v11 = vshrl.u32 %v749_v63, 16  ;;  %v1141_v21 = vpop.permute.xlu1 %1140 }
 0x1fe   : > { %v1165_v12 = vrot.slane %v1157_v3, %v3209_v43  ;;  %v796_v14 = vpack.i.b16 %v784_v53, %v750_v5  ;;  %v798_v15 = vshrl.u32 %v750_v5, 16  ;;  %v812_v16 = vpack.i.b16 %v785_v57, %v751_v6 }
 0x1ff   : > { %v792_v13 = vpack.i.b16 %v791_v61, %v790_v8  ;;  %v808_v17 = vpack.i.b16 %v807_v2, %v806_v11  ;;  %v814_v18 = vshrl.u32 %v751_v6, 16  ;;  %v818_v19 = vcombine.low %v788_v7, %v804_v10 }
 0x200   : > { %v1172_v20 = vrot.slane %v1158_v4, %v3209_v43  ;;  %v800_v22 = vpack.i.b16 %v799_v1, %v798_v15  ;;  %v826_v23 = vcombine.low %v796_v14, %v812_v16  ;;  %v1190_v30 = vrot.slane %v1141_v21, %v3206_v39 }
 0x201   : > { %v816_v25 = vpack.i.b16 %v815_v9, %v814_v18  ;;  %v843_v26 = vcombine.low %v792_v13, %v808_v17  ;;  %v825_v27 = vrot.slane %v818_v19, %v3206_v39  ;;  %v1173_v32 = vcombine.high %v1165_v12, %v2888_v52 }
 0x202   : > { %v833_v29 = vrot.slane %v826_v23, %v3206_v39  ;;  %v1174_v33 = vcombine.high %v1172_v20, %v2888_v52  ;;  %v1191_v35 = vcombine.low %v1182_v24, %v1190_v30  ;;  %v1192_v36 = vcombine.high %v1182_v24, %v1190_v30 }
 0x203   : > { %v851_v31 = vcombine.low %v800_v22, %v816_v25  ;;  %v850_v37 = vrot.slane %v843_v26, %v3206_v39  ;;  %v1213_v41 = vshrl.u32 %v1165_v12, 16  ;;  %v1221_v46 = vshrl.u32 %v1173_v32, 16 }
 0x204   : > { %v834_v34 = vcombine.low %v825_v27, %v833_v29  ;;  %v1199_v42 = vrot.slane %v1191_v35, %v3209_v43  ;;  %v1206_v44 = vrot.slane %v1192_v36, %v3209_v43  ;;  %v1229_v47 = vshrl.u32 %v1172_v20, 16 }
 0x205   : > { %v858_v38 = vrot.slane %v851_v31, %v3206_v39  ;;  %v1237_v48 = vshrl.u32 %v1174_v33, 16 }
 0x206   : > { %v841_v40 = vrot.slane %v834_v34, %v3209_v43  ;;  %v1207_v51 = vcombine.high %v1199_v42, %v2888_v52  ;;  %v1208_v53 = vcombine.high %v1206_v44, %v2888_v52  ;;  %v1211_v55 = vpack.i.b16 %v1199_v42, %v1165_v12 }
 0x207   : > { %v859_v45 = vcombine.low %v850_v37, %v858_v38  ;;  %v1214_v56 = vshrl.u32 %v1199_v42, 16  ;;  %v1227_v57 = vpack.i.b16 %v1206_v44, %v1172_v20  ;;  %v1230_v61 = vshrl.u32 %v1206_v44, 16 }
 0x208   : > { %v842_v49 = vcombine.high %v841_v40, %v2888_v52  ;;  %v872_v50 = vshrl.u32 %v841_v40, 16  ;;  %v1219_v59 = vpack.i.b16 %v1207_v51, %v1173_v32  ;;  %v1222_v60 = vshrl.u32 %v1207_v51, 16 }
 0x209   : > { %v866_v54 = vrot.slane %v859_v45, %v3209_v43  ;;  %v1215_v2 = vpack.i.b16 %v1214_v56, %v1213_v41  ;;  %v1231_v4 = vpack.i.b16 %v1230_v61, %v1229_v47  ;;  %v1235_v5 = vpack.i.b16 %v1208_v53, %v1174_v33  ;;  %v894_v47 = vpop.permute.xlu1 %893 }
 0x20a   : > { %v880_v58 = vshrl.u32 %v842_v49, 16  ;;  %v1223_v3 = vpack.i.b16 %v1222_v60, %v1221_v46  ;;  %v1238_v6 = vshrl.u32 %v1208_v53, 16  ;;  %v1241_v10 = vcombine.low %v1211_v55, %v1227_v57  ;;  %v892_v46 = vpop.permute.xlu0 %891 }
 0x20b   : > { %v867_v62 = vcombine.high %v866_v54, %v2888_v52  ;;  %v870_v63 = vpack.i.b16 %v866_v54, %v841_v40  ;;  %v873_v1 = vshrl.u32 %v866_v54, 16  ;;  %v1249_v12 = vcombine.low %v1219_v59, %v1235_v5 }
 0x20c   : > { %v1239_v11 = vpack.i.b16 %v1238_v6, %v1237_v48  ;;  %v1266_v13 = vcombine.low %v1215_v2, %v1231_v4  ;;  %v1248_v17 = vrot.slane %v1241_v10, %v3206_v39  ;;  %v903_v45 = vrot.slane %v3201_v28, %v3206_v39 }
 0x20d   : > { %v874_v7 = vpack.i.b16 %v873_v1, %v872_v50  ;;  %v878_v8 = vpack.i.b16 %v867_v62, %v842_v49  ;;  %v881_v9 = vshrl.u32 %v867_v62, 16  ;;  %885 = vst.msk [vmem:[#allocation2] sm:$0xf] %vm884_vm2, %v870_v63  ;;  %v1256_v15 = vrot.slane %v1249_v12, %v3206_v39 }
 0x20e   : > { %v1274_v16 = vcombine.low %v1223_v3, %v1239_v11  ;;  %v1273_v18 = vrot.slane %v1266_v13, %v3206_v39  ;;  %v911_v48 = vrot.slane %v894_v47, %v3206_v39  ;;  %v937_v49 = vrot.slane %v892_v46, %v3206_v39  ;;  %v896_v53 = vpop.permute.xlu0 %895 }
 0x20f   : > { %v882_v14 = vpack.i.b16 %v881_v9, %v880_v58  ;;  %886 = vst.msk [vmem:[#allocation2 + $0x4] sm:$0xf] %vm884_vm2, %v874_v7  ;;  %887 = vst.msk [vmem:[#allocation2 + $0x8] sm:$0xf] %vm884_vm2, %v878_v8  ;;  %v1257_v20 = vcombine.low %v1248_v17, %v1256_v15  ;;  %v945_v54 = vrot.slane %v896_v53, %v3206_v39 }
 0x210   : > { %v1281_v19 = vrot.slane %v1274_v16, %v3206_v39  ;;  %v912_v50 = vcombine.low %v903_v45, %v911_v48  ;;  %v913_v51 = vcombine.high %v903_v45, %v911_v48 }
 0x211   : > { %888 = vst.msk [vmem:[#allocation2 + $0xc] sm:$0xf] %vm884_vm2, %v882_v14  ;;  %v1264_v27 = vrot.slane %v1257_v20, %v3209_v43  ;;  %v946_v57 = vcombine.low %v937_v49, %v945_v54  ;;  %v947_v58 = vcombine.high %v937_v49, %v945_v54 }
 0x212   : > { %v1282_v21 = vcombine.low %v1273_v18, %v1281_v19  ;;  %v920_v55 = vrot.slane %v912_v50, %v3209_v43  ;;  %v927_v56 = vrot.slane %v913_v51, %v3209_v43 }
 0x213   : > { %v1294_v32 = vshrl.u32 %v1264_v27, 16  ;;  %v1265_v38 = vcombine.high %v1264_v27, %v2888_v52  ;;  %v954_v60 = vrot.slane %v946_v57, %v3209_v43  ;;  %v961_v61 = vrot.slane %v947_v58, %v3209_v43 }
 0x214   : > { %v1303_v22 = vld [vmem:[#allocation2] sm:$0xf]  ;;  %v1289_v25 = vrot.slane %v1282_v21, %v3209_v43  ;;  %v928_v59 = vcombine.high %v920_v55, %v2888_v52  ;;  %v929_v28 = vcombine.high %v927_v56, %v2888_v52  ;;  %v968_v62 = vshrl.u32 %v920_v55, 16 }
 0x215   : > { %v1316_v23 = vsel %vm1311_vm3, %v1303_v22, 0  ;;  %v1300_v42 = vshrl.u32 %v1265_v38, 16  ;;  %v984_v1 = vshrl.u32 %v927_v56, 16  ;;  %v962_v3 = vcombine.high %v954_v60, %v2888_v52 }
 0x216   : > { %2299 = vmatpush3.bf16.xpose.msra.mxu1 %v1316_v23  ;;  %v1304_v24 = vld [vmem:[#allocation2 + $0x4] sm:$0xf]  ;;  %v1295_v29 = vshrl.u32 %v1289_v25, 16  ;;  %v1305_v30 = vld [vmem:[#allocation2 + $0x8] sm:$0xf]  ;;  %v1293_v31 = vpack.i.b16 %v1289_v25, %v1264_v27  ;;  %v1290_v36 = vcombine.high %v1289_v25, %v2888_v52  ;;  %v976_v63 = vshrl.u32 %v928_v59, 16 }
 0x217   : > { %v1362_v26 = vsel %vm1311_vm3, %v1304_v24, 0  ;;  %2310 = vmatprep.subr.bf16.mxu1 %v2881_v0  ;;  %v1408_v34 = vsel %vm1311_vm3, %v1305_v30, 0  ;;  %v992_v2 = vshrl.u32 %v929_v28, 16  ;;  %v963_v4 = vcombine.high %v961_v61, %v2888_v52 }
 0x218   : > { %2305 = vmatpush3.bf16.xpose.msra.mxu0 %v1362_v26  ;;  %v1306_v33 = vld [vmem:[#allocation2 + $0xc] sm:$0xf]  ;;  %v1296_v35 = vpack.i.b16 %v1295_v29, %v1294_v32  ;;  %v1301_v40 = vshrl.u32 %v1290_v36, 16  ;;  %v1299_v41 = vpack.i.b16 %v1290_v36, %v1265_v38  ;;  %v969_v5 = vshrl.u32 %v954_v60, 16 }
 0x219   : > { %2316 = vmatprep.subr.bf16.mxu0 %v2881_v0  ;;  %v1454_v37 = vsel %vm1311_vm3, %v1306_v33, 0  ;;  %v985_v6 = vshrl.u32 %v961_v61, 16  ;;  %v966_v7 = vpack.i.b16 %v954_v60, %v920_v55  ;;  %v982_v8 = vpack.i.b16 %v961_v61, %v927_v56 }
 0x21a   : > { %v1302_v44 = vpack.i.b16 %v1301_v40, %v1300_v42  ;;  %v977_v9 = vshrl.u32 %v962_v3, 16  ;;  %v993_v10 = vshrl.u32 %v963_v4, 16  ;;  %v970_v11 = vpack.i.b16 %v969_v5, %v968_v62 }
 0x21b   : > { %v974_v12 = vpack.i.b16 %v962_v3, %v928_v59  ;;  %v986_v13 = vpack.i.b16 %v985_v6, %v984_v1  ;;  %v990_v14 = vpack.i.b16 %v963_v4, %v929_v28  ;;  %v996_v15 = vcombine.low %v966_v7, %v982_v8 }
 0x21c   : > { %v978_v16 = vpack.i.b16 %v977_v9, %v976_v63  ;;  %v994_v17 = vpack.i.b16 %v993_v10, %v992_v2 }
 0x21d   : > { %2301 = vmatmul.mubr.msk.bf16.vlgmr.msra.gmra.mxu1 %vm1311_vm3, %v1293_v31  ;;  %v1003_v18 = vrot.slane %v996_v15, %v3206_v39  ;;  %v1004_v19 = vcombine.low %v974_v12, %v990_v14  ;;  %v1021_v20 = vcombine.low %v970_v11, %v986_v13 }
 0x21e   : > { %2311 = vmatpush3.bf16.xpose.msra.mxu1 %v1408_v34  ;;  %2312 = vmatprep.mubr.msk.bf16.mxu1 %vm2882_vm0, %v2881_v0  ;;  %v1029_v21 = vcombine.low %v978_v16, %v994_v17 }
 0x21f   : > { %2307 = vmatmul.mubr.msk.bf16.vlgmr.msra.gmra.mxu0 %vm1311_vm3, %v1296_v35  ;;  %2322 = vmatprep.subr.bf16.mxu1 %v2881_v0  ;;  %v1011_v22 = vrot.slane %v1004_v19, %v3206_v39  ;;  %v1028_v23 = vrot.slane %v1021_v20, %v3206_v39 }
 0x220   : > { %2317 = vmatpush3.bf16.xpose.msra.mxu0 %v1454_v37  ;;  %2318 = vmatprep.mubr.msk.bf16.mxu0 %vm2882_vm0, %v2881_v0  ;;  %v1036_v24 = vrot.slane %v1029_v21, %v3206_v39 }
 0x221   : > { %2328 = vmatprep.subr.bf16.mxu0 %v2881_v0  ;;  %v1012_v25 = vcombine.low %v1003_v18, %v1011_v22 }
 0x222   : > { %v1037_v26 = vcombine.low %v1028_v23, %v1036_v24 }
 0x223   : > { %v1019_v27 = vrot.slane %v1012_v25, %v3209_v43 }
 0x224   : > { %v1044_v29 = vrot.slane %v1037_v26, %v3209_v43 }
 0x225   : > { %2313 = vmatmul.mubr.msk.bf16.vlgmr.msra.gmra.mxu1 %vm1311_vm3, %v1299_v41  ;;  %v1020_v30 = vcombine.high %v1019_v27, %v2888_v52  ;;  %v1050_v31 = vshrl.u32 %v1019_v27, 16 }
 0x226   : > { %2324 = vmatprep.mubr.msk.bf16.mxu1 %vm2882_vm0, %v2881_v0  ;;  %v1045_v32 = vcombine.high %v1044_v29, %v2888_v52  ;;  %v1048_v33 = vpack.i.b16 %v1044_v29, %v1019_v27  ;;  %v1051_v34 = vshrl.u32 %v1044_v29, 16 }
 0x227   : > { %2319 = vmatmul.mubr.msk.bf16.vlgmr.msra.gmra.mxu0 %vm1311_vm3, %v1302_v44  ;;  %v1058_v35 = vshrl.u32 %v1020_v30, 16 }
 0x228   : > { %2330 = vmatprep.mubr.msk.bf16.mxu0 %vm2882_vm0, %v2881_v0  ;;  %v1052_v36 = vpack.i.b16 %v1051_v34, %v1050_v31  ;;  %v1056_v37 = vpack.i.b16 %v1045_v32, %v1020_v30  ;;  %v1059_v38 = vshrl.u32 %v1045_v32, 16  ;;  %1062 = vst.msk [vmem:[#allocation3] sm:$0xf] %vm884_vm2, %v1048_v33  ;;  %v2506_v32 = vld [vmem:[%s3419_s9 + $0x8] sm:$0xff]  }
 0x22a   : > { %v1060_v40 = vpack.i.b16 %v1059_v38, %v1058_v35  ;;  %1063 = vst.msk [vmem:[#allocation3 + $0x4] sm:$0xf] %vm884_vm2, %v1052_v36  ;;  %1064 = vst.msk [vmem:[#allocation3 + $0x8] sm:$0xf] %vm884_vm2, %v1056_v37 }
 0x22c   : > { %1065 = vst.msk [vmem:[#allocation3 + $0xc] sm:$0xf] %vm884_vm2, %v1060_v40 }
 0x22f   : > { %v1307_v41 = vld [vmem:[#allocation3] sm:$0xf] }
 0x230   : > { %v1561_v42 = vsel %vm1559_vm4, %v1307_v41, 0 }
 0x231   : > { %2323 = vmatpush3.bf16.msra.mxu1 %v1561_v42  ;;  %v1308_v44 = vld [vmem:[#allocation3 + $0x4] sm:$0xf]  ;;  %v1309_v16 = vld [vmem:[#allocation3 + $0x8] sm:$0xf] }
 0x232   : > { %v1607_v45 = vsel %vm1559_vm4, %v1308_v44, 0  ;;  %2334 = vmatprep.subr.bf16.mxu1 %v2881_v0  ;;  %v1653_v21 = vsel %vm1559_vm4, %v1309_v16, 0 }
 0x233   : > { %2329 = vmatpush3.bf16.msra.mxu0 %v1607_v45  ;;  %v1310_v20 = vld [vmem:[#allocation3 + $0xc] sm:$0xf] }
 0x234   : > { %2340 = vmatprep.subr.bf16.mxu0 %v2881_v0  ;;  %v1699_v24 = vsel %vm1559_vm4, %v1310_v20, 0 }
 0x2dd   : > { %v1352_v46 = vpop.f32.mrf.mxu1 }
 0x2de   : > { %v1496_v47 = vsel %vm1311_vm3, %v1352_v46, -inf }
 0x2df   : > { %1497 = vmax.xlane.f32.xlu1 %v1496_v47  ;;  %v2302_v48 = vpop.f32.mrf.mxu1  ;;  %v1398_v49 = vpop.f32.mrf.mxu0 }
 0x2e0   : > { %v1499_v50 = vsel %vm1311_vm3, %v1398_v49, -inf }
 0x2e1   : > { %v1355_v51 = vpop.f32.mrf.mxu1  ;;  %1500 = vmax.xlane.f32.xlu0 %v1499_v50  ;;  %v2308_v53 = vpop.f32.mrf.mxu0 }
 0x2e3   : > { %v2303_v54 = vpop.f32.mrf.mxu1  ;;  %v1401_v55 = vpop.f32.mrf.mxu0 }
 0x2e5   : > { %v2309_v56 = vpop.f32.mrf.mxu0  ;;  %v1444_v57 = vpop.f32.mrf.mxu1 }
 0x2e6   : > { %v1502_v58 = vsel %vm1311_vm3, %v1444_v57, -inf }
 0x2e7   : > { %v2314_v59 = vpop.f32.mrf.mxu1  ;;  %1503 = vmax.xlane.f32.xlu0 %v1502_v58  ;;  %v1490_v28 = vpop.f32.mrf.mxu0 }
 0x2e8   : > { %v1505_v60 = vsel %vm1311_vm3, %v1490_v28, -inf }
 0x2e9   : > { %v1447_v61 = vpop.f32.mrf.mxu1  ;;  %1506 = vmax.xlane.f32.xlu1 %v1505_v60  ;;  %v2320_v62 = vpop.f32.mrf.mxu0 }
 0x2eb   : > { %v2315_v63 = vpop.f32.mrf.mxu1  ;;  %v1493_v1 = vpop.f32.mrf.mxu0 }
 0x2ed   : > { %v2321_v2 = vpop.f32.mrf.mxu0 }
 0x368   : > { %v1498_v3 = vpop.xlane.xlu1 %1497 }
 0x369   : > { %v1520_v4 = vsub.f32 %v1352_v46, %v1498_v3  ;;  %v1508_v33 = vsub.f32 -inf, %v1498_v3 }
 0x36a   : > { %v1501_v5 = vpop.xlane.xlu0 %1500 }
 0x36b   : > { %v1524_v6 = vmul.f32 1.442695, %v1520_v4  ;;  %v1521_v7 = vsub.f32 %v1398_v49, %v1501_v5  ;;  %v1509_v34 = vsub.f32 -inf, %v1501_v5  ;;  %v1512_v35 = vmul.f32 1.442695, %v1508_v33 }
 0x36d   : > { %v1526_v8 = vmul.f32 1.442695, %v1521_v7  ;;  %2508 = vpow2.f32 %v1524_v6  ;;  %v1514_v37 = vmul.f32 1.442695, %v1509_v34 }
 0x36f   : > { %2510 = vpow2.f32 %v1526_v8 }
 0x370   : > { %v1504_v9 = vpop.xlane.xlu0 %1503 }
 0x371   : > { %v1522_v10 = vsub.f32 %v1444_v57, %v1504_v9  ;;  %v1510_v36 = vsub.f32 -inf, %v1504_v9 }
 0x372   : > { %v1507_v11 = vpop.xlane.xlu1 %1506 }
 0x373   : > { %v1528_v12 = vmul.f32 1.442695, %v1522_v10  ;;  %v1523_v13 = vsub.f32 %v1490_v28, %v1507_v11  ;;  %v1511_v38 = vsub.f32 -inf, %v1507_v11  ;;  %v1516_v40 = vmul.f32 1.442695, %v1510_v36 }
 0x375   : > { %v1530_v14 = vmul.f32 1.442695, %v1523_v13  ;;  %2512 = vpow2.f32 %v1528_v12  ;;  %v1518_v41 = vmul.f32 1.442695, %v1511_v38 }
 0x377   : > { %2514 = vpow2.f32 %v1530_v14 }
 0x378   : > { %2516 = vpow2.f32 %v1512_v35 }
 0x379   : > { %2518 = vpow2.f32 %v1514_v37 }
 0x37a   : > { %v2509_v15 = vpop.eup %2508  ;;  %2520 = vpow2.f32 %v1516_v40 }
 0x37b   : > { %v1536_v17 = vsel %vm1311_vm3, %v2509_v15, 0.0  ;;  %v1552_v18 = vpack.c.bf16 %v2509_v15, %v2509_v15  ;;  %2522 = vpow2.f32 %v1518_v41 }
 0x37c   : > { %v2511_v19 = vpop.eup %2510  ;;  %1537 = vadd.xlane.f32.xlu0 %v1536_v17 }
 0x37d   : > { %2325 = vmatmul.mubr.msk.bf16.vlgmr.msra.gmra.mxu1 %vm1311_vm3, %v1552_v18  ;;  %v1539_v22 = vsel %vm1311_vm3, %v2511_v19, 0.0  ;;  %v1553_v23 = vpack.c.bf16 %v2511_v19, %v2511_v19 }
 0x37e   : > { %2335 = vmatpush3.bf16.msra.mxu1 %v1653_v21  ;;  %1540 = vadd.xlane.f32.xlu1 %v1539_v22 }
 0x37f   : > { %2331 = vmatmul.mubr.msk.bf16.vlgmr.msra.gmra.mxu0 %vm1311_vm3, %v1553_v23  ;;  %2336 = vmatprep.mubr.msk.bf16.mxu1 %vm2882_vm0, %v2881_v0 }
 0x380   : > { %2341 = vmatpush3.bf16.msra.mxu0 %v1699_v24  ;;  %2342 = vmatprep.mubr.msk.bf16.mxu0 %vm2882_vm0, %v2881_v0 }
 0x381   : > { %2346 = vmatprep.subr.bf16.mxu1 %v2881_v0 }
 0x382   : > { %v2513_v25 = vpop.eup %2512 }
 0x383   : > { %v1542_v26 = vsel %vm1311_vm3, %v2513_v25, 0.0  ;;  %v1554_v27 = vpack.c.bf16 %v2513_v25, %v2513_v25 }
 0x384   : > { %v2515_v29 = vpop.eup %2514  ;;  %1543 = vadd.xlane.f32.xlu0 %v1542_v26 }
 0x385   : > { %2337 = vmatmul.mubr.msk.bf16.vlgmr.msra.gmra.mxu1 %vm1311_vm3, %v1554_v27  ;;  %v1545_v30 = vsel %vm1311_vm3, %v2515_v29, 0.0  ;;  %v1555_v31 = vpack.c.bf16 %v2515_v29, %v2515_v29  ;;  %v2517_v42 = vpop.eup %2516 }
 0x386   : > { %1546 = vadd.xlane.f32.xlu1 %v1545_v30  ;;  %2350 = vmatprep.mubr.msk.bf16.mxu1 %vm2882_vm0, %v2881_v0  ;;  %v2519_v44 = vpop.eup %2518  ;;  %v1532_v46 = vmul.f32 0.0, %v2517_v42 }
 0x387   : > { %2343 = vmatmul.mubr.msk.bf16.vlgmr.msra.gmra.mxu0 %vm1311_vm3, %v1555_v31  ;;  %2347 = vmatpush3.bf16.msra.mxu1 %v2506_v32  ;;  %v2521_v47 = vpop.eup %2520 }
 0x388   : > { %2348 = vmatprep.subr.bf16.mxu1 %v2881_v0  ;;  %v1533_v0 = vmul.f32 0.0, %v2519_v44  ;;  %v2523_v50 = vpop.eup %2522  ;;  %v1534_v54 = vmul.f32 0.0, %v2521_v47 }
 0x389   : > { %v1535_v57 = vmul.f32 0.0, %v2523_v50 }
 0x405   : > { %v1538_v45 = vpop.xlane.xlu0 %1537 }
 0x406   : > { %v1548_v49 = vadd.f32 %v1538_v45, %v1532_v46 }
 0x407   : > { %v1541_v48 = vpop.xlane.xlu1 %1540 }
 0x408   : > { %v1549_v53 = vadd.f32 %v1541_v48, %v1533_v0  ;;  %2524 = vrcp.f32 %v1548_v49 }
 0x40a   : > { %2526 = vrcp.f32 %v1549_v53 }
 0x40d   : > { %v1544_v51 = vpop.xlane.xlu0 %1543 }
 0x40e   : > { %v1550_v56 = vadd.f32 %v1544_v51, %v1534_v54 }
 0x40f   : > { %v1547_v55 = vpop.xlane.xlu1 %1546 }
 0x410   : > { %v1551_v58 = vadd.f32 %v1547_v55, %v1535_v57  ;;  %2528 = vrcp.f32 %v1550_v56 }
 0x412   : > { %2530 = vrcp.f32 %v1551_v58 }
 0x415   : > { %v2525_v2 = vpop.eup %2524 }
 0x417   : > { %v2527_v6 = vpop.eup %2526 }
 0x41d   : > { %v2529_v11 = vpop.eup %2528 }
 0x41f   : > { %v2531_v17 = vpop.eup %2530 }
 0x43d   : > { %v1597_v59 = vpop.f32.mrf.mxu1 }
 0x43e   : > { %v1741_v61 = vadd.f32 %v1597_v59, %v1532_v46 }
 0x43f   : > { %v2326_v28 = vpop.f32.mrf.mxu1  ;;  %v1643_v60 = vpop.f32.mrf.mxu0 }
 0x440   : > { %v1742_v1 = vadd.f32 %v1643_v60, %v1533_v0  ;;  %v1749_v5 = vmul.f32 %v2525_v2, %v1741_v61 }
 0x441   : > { %v1600_v62 = vpop.f32.mrf.mxu1  ;;  %v2332_v63 = vpop.f32.mrf.mxu0 }
 0x442   : > { %v1750_v9 = vmul.f32 %v2527_v6, %v1742_v1  ;;  %v1753_v14 = vpack.c.bf16 %v1749_v5, %v1749_v5 }
 0x443   : > { %v2327_v3 = vpop.f32.mrf.mxu1  ;;  %v1646_v4 = vpop.f32.mrf.mxu0 }
 0x444   : > { %v1787_v20 = vpack.c.bf16 %v1750_v9, %v1750_v9  ;;  %v1760_v25 = vrot.slane %v1753_v14, %v3206_v39  ;;  %v2507_v4 = vld [vmem:[%s3419_s9] sm:$0xff]  }
 0x445   : > { %v2333_v7 = vpop.f32.mrf.mxu0  ;;  %v1689_v8 = vpop.f32.mrf.mxu1  ;;  %2349 = vmatpush3.bf16.msra.mxu1 %v2507_v4 }
 0x446   : > { %v1743_v10 = vadd.f32 %v1689_v8, %v1534_v54  ;;  %v1794_v30 = vrot.slane %v1787_v20, %v3206_v39 }
 0x447   : > { %v2338_v12 = vpop.f32.mrf.mxu1  ;;  %v1735_v13 = vpop.f32.mrf.mxu0 }
 0x448   : > { %v1751_v15 = vmul.f32 %v2529_v11, %v1743_v10  ;;  %v1744_v16 = vadd.f32 %v1735_v13, %v1535_v57 }
 0x449   : > { %v1692_v18 = vpop.f32.mrf.mxu1  ;;  %v2344_v19 = vpop.f32.mrf.mxu0 }
 0x44a   : > { %v1761_v21 = vpack.c.bf16 %v1751_v15, %v1751_v15  ;;  %v1752_v22 = vmul.f32 %v2531_v17, %v1744_v16 }
 0x44b   : > { %v2339_v23 = vpop.f32.mrf.mxu1  ;;  %v1738_v24 = vpop.f32.mrf.mxu0 }
 0x44c   : > { %v1768_v26 = vrot.slane %v1761_v21, %v3206_v39  ;;  %v1795_v27 = vpack.c.bf16 %v1752_v22, %v1752_v22  ;;  %v2238_v24 = vld [vmem:[%s3472_s11] ss:$0 sm:$0xff] }
 0x44d   : > { %v2345_v29 = vpop.f32.mrf.mxu0 }
 0x44e   : > { %v1769_v31 = vcombine.low %v1760_v25, %v1768_v26  ;;  %v1770_v32 = vcombine.high %v1760_v25, %v1768_v26  ;;  %v1802_v33 = vrot.slane %v1795_v27, %v3206_v39 }
 0x450   : > { %v1777_v34 = vrot.slane %v1769_v31, %v3209_v43  ;;  %v1784_v35 = vrot.slane %v1770_v32, %v3209_v43  ;;  %v1803_v36 = vcombine.low %v1794_v30, %v1802_v33  ;;  %v1804_v37 = vcombine.high %v1794_v30, %v1802_v33 }
 0x452   : > { %v1785_v38 = vcombine.high %v1777_v34, %v2888_v52  ;;  %v1811_v40 = vrot.slane %v1803_v36, %v3209_v43  ;;  %v1818_v41 = vrot.slane %v1804_v37, %v3209_v43  ;;  %v1786_v42 = vcombine.high %v1784_v35, %v2888_v52 }
 0x453   : > { %v1825_v44 = vshrl.u32 %v1777_v34, 16  ;;  %v1841_v0 = vshrl.u32 %v1784_v35, 16 }
 0x454   : > { %v1819_v45 = vcombine.high %v1811_v40, %v2888_v52  ;;  %v1820_v46 = vcombine.high %v1818_v41, %v2888_v52  ;;  %v1823_v47 = vpack.i.b16 %v1811_v40, %v1777_v34  ;;  %v1826_v48 = vshrl.u32 %v1811_v40, 16 }
 0x455   : > { %v1833_v49 = vshrl.u32 %v1785_v38, 16  ;;  %v1839_v50 = vpack.i.b16 %v1818_v41, %v1784_v35  ;;  %v1842_v51 = vshrl.u32 %v1818_v41, 16  ;;  %v1849_v57 = vshrl.u32 %v1786_v42, 16 }
 0x456   : > { %v1827_v53 = vpack.i.b16 %v1826_v48, %v1825_v44  ;;  %v1831_v54 = vpack.i.b16 %v1819_v45, %v1785_v38  ;;  %v1834_v55 = vshrl.u32 %v1819_v45, 16  ;;  %v1847_v56 = vpack.i.b16 %v1820_v46, %v1786_v42 }
 0x457   : > { %v1843_v58 = vpack.i.b16 %v1842_v51, %v1841_v0  ;;  %v1850_v59 = vshrl.u32 %v1820_v46, 16  ;;  %v1853_v28 = vcombine.low %v1823_v47, %v1839_v50 }
 0x458   : > { %v1835_v60 = vpack.i.b16 %v1834_v55, %v1833_v49  ;;  %v1861_v61 = vcombine.low %v1831_v54, %v1847_v56 }
 0x459   : > { %v1851_v62 = vpack.i.b16 %v1850_v59, %v1849_v57  ;;  %v1878_v63 = vcombine.low %v1827_v53, %v1843_v58  ;;  %v1860_v1 = vrot.slane %v1853_v28, %v3206_v39 }
 0x45a   : > { %v1868_v2 = vrot.slane %v1861_v61, %v3206_v39 }
 0x45b   : > { %v1886_v3 = vcombine.low %v1835_v60, %v1851_v62  ;;  %v1885_v6 = vrot.slane %v1878_v63, %v3206_v39 }
 0x45c   : > { %v1869_v5 = vcombine.low %v1860_v1, %v1868_v2 }
 0x45d   : > { %v1893_v7 = vrot.slane %v1886_v3, %v3206_v39 }
 0x45e   : > { %v1876_v8 = vrot.slane %v1869_v5, %v3209_v43 }
 0x45f   : > { %v1894_v9 = vcombine.low %v1885_v6, %v1893_v7 }
 0x460   : > { %v1877_v11 = vcombine.high %v1876_v8, %v2888_v52  ;;  %v1906_v12 = vshrl.u32 %v1876_v8, 16 }
 0x461   : > { %v1901_v10 = vrot.slane %v1894_v9, %v3209_v43 }
 0x462   : > { %v1912_v18 = vshrl.u32 %v1877_v11, 16 }
 0x463   : > { %v1907_v13 = vshrl.u32 %v1901_v10, 16  ;;  %v1902_v14 = vcombine.high %v1901_v10, %v2888_v52  ;;  %v1905_v15 = vpack.i.b16 %v1901_v10, %v1876_v8 }
 0x465   : > { %v1908_v16 = vpack.i.b16 %v1907_v13, %v1906_v12  ;;  %v1911_v17 = vpack.i.b16 %v1902_v14, %v1877_v11  ;;  %v1913_v19 = vshrl.u32 %v1902_v14, 16 }
 0x467   : > { %1915 = vrot.lane.b32.xlu0 %v1908_v16, %s2889_s17  ;;  %1917 = vrot.lane.b32.xlu1 %v1911_v17, %s2890_s28  ;;  %v1914_v39 = vpack.i.b16 %v1913_v19, %v1912_v18 }
 0x46b   : > { %1919 = vrot.lane.b32.xlu1 %v1914_v39, %s2891_s22 }
 0x4d9   : > { %v1916_v43 = vpop.permute.xlu0 %1915  ;;  %v1918_v20 = vpop.permute.xlu1 %1917 }
 0x4da   : > { %v1923_v21 = vsel %vm1311_vm3, %v1905_v15, %v1916_v43 }
 0x4db   : > { %v1926_v52 = vsel %vm1924_vm5, %v1923_v21, %v1918_v20 }
 0x4dd   : > { %v1920_v22 = vpop.permute.xlu1 %1919 }
 0x4de   : > { %v1929_v23 = vsel %vm1927_vm6, %v1926_v52, %v1920_v22 }
 0x4df   : > { %2351 = vmatmul.mubr.msk.bf16.vlgmr.msra.gmra.mxu1 %vm601_vm1, %v1929_v23 }
 0x59f   : > { %v1989_v25 = vpop.f32.mrf.mxu1 }
 0x5a0   : > { %v1990_v26 = vadd.f32 %v2238_v24, %v1989_v25 }
 0x5a1   : > { %v2352_v27 = vpop.f32.mrf.mxu1 }
 0x5a2   : > { %1995 = vst.msk [vmem:[%s570_s5] sm:$0xff] %vm601_vm1, %v1990_v26 }
 0x5a3   : > { %v1992_v29 = vpop.f32.mrf.mxu1 }
 0x5a4   : > { %2785 = shalt.err (!%p2782_p11)
}
 0x5a5   : > { %s2786_s25 = scalar_lea.hbm %s3361_s12, 128  ;;  %s2790_s28 = scalar_lea.hbm %s3473_s23, 256 }
 0x5a6   : > { %p2787_p3 = scmp.ne.s32.totalorder %s3361_s12, %s2786_s25  ;;  %p2791_p4 = scmp.lt.s32.totalorder %s3361_s12, %s3473_s23 }
 0x5a7   : > { %p2792_p8 = scmp.lt.s32.totalorder %s2790_s28, %s2786_s25 }
 0x5a8   : > { %p2788_p5 = pnand %p2787_p3, %p3474_p12 }
 0x5a9   : > { %p2793_p9 = por %p2792_p8, %p2791_p4 }
 0x5aa   : > { %p2789_p0 = pneg %p2788_p5 }
 0x5ac   : > { %p2794_p1 = pnand %p2793_p9, %p2789_p0 }
 0x5ae   : > { %2797 = shalt.err (!%p2794_p1)
}
 0x5af   : > { %2384 = dma.vmem_to_hbm [thread:$0]  (%p3474_p12), %s3363_s21, 128, %s3361_s12, %s1997_s29   ;;  %v2353_v30 = vpop.f32.mrf.mxu1 }
 0x5b0 PF: > { %s3475_s30 = sld [smem:[#allocation26_spill]] }
 0x5b1   : > { %s3476_s10 = sld [smem:[#allocation31_spill]] }
 0x5b2   : > { %s3477_s11 = sld [smem:[#allocation28_spill]] }
 0x5b6   : > { %s2023_s15 = sand.u32 1, %s3475_s30  }
 0x5b7   : > { %p3478_p10 = scmp.ne.s32.totalorder %s3476_s10, 0  ;;  %s2024_s5 = scalar_lea.sflag [#allocation6], %s2023_s15 }
 0x5b8   : > { %p3479_p7 = scmp.ge.s32.totalorder %s3477_s11, 2 }
 0x5ba   : > { %p2416_p13 = pnand %p3479_p7, %p3478_p10 }
 0x5bc   : > { %p2417_p6 = pneg %p2416_p13 }
 0x5be   : > { %2843 = dma.done.wait (%p2417_p6), %s2024_s5, 128  }
 0x5bf   : > { %2845 = vsyncadd (%p2417_p6), %s2024_s5, 4294967168  ;;  %s33_s22 = sadd.s32 1, %s3477_s11   ;;  %s3480_s16 = sld [smem:[#allocation30_spill]] }
 0x5c0   : > { %p30_p2 = scmp.ge.s32.totalorder %s33_s22, 4   ;;  %s3481_s20 = sld [smem:[#allocation27_spill]] }
 0x5c1   : > { %s3482_s21 = sld [smem:[#allocation29_spill]]  ;;  %s3483_s17 = smov %s2852_s18 }
 0x5c2   : > { %s3484_s18 = smov %s2856_s19  ;;  %32 = sbr.rel (!%p30_p2) target bundleno = 17 (0x11), region = 161 }
 0x5c5   : > { %s3485_s19 = smov %s3480_s16 }
 0x5c7   :  { %2029 = vsyncpa [#allocation5], 1 }
 0x5c8   :  { %2031 = vsyncpa [#allocation5 + $0x1], 1 }
 0x5c9   :  { %2032 = vsyncpa [#allocation8], 1 }
 0x5ca   :  { %2034 = vsyncpa [#allocation8 + $0x1], 1 }
 0x5cb   :  { %2035 = vsyncpa [#allocation11], 1 }
 0x5cc   :  { %2036 = vsyncpa [#allocation14], 1 }
 0x5cd   :  { %2037 = vsyncpa [#allocation17], 1 }
 0x5ce   :  { %2038 = vsyncpa [#allocation6], 1 }
 0x5cf   :  { %2040 = vsyncpa [#allocation6 + $0x1], 1 }

</bundles_post_ra>
